<compile_context>
chip_gen: v5e
topology: v5e:2x2
jax: 0.10.0
libtpu: 0.0.40
codegen_flags: <defaults>
</compile_context>

<pallas_src>
import math

import jax
import jax.numpy as jnp
from jax import lax
from jax.experimental import pallas as pl
from jax.experimental.pallas import tpu as pltpu

_MIB = 1024 * 1024
_INV_SQRT2 = 1.0 / math.sqrt(2.0)


def _round_up(n, m):
    return ((n + m - 1) // m) * m


def _vmem_budget_bytes():
    """~80% of per-core VMEM capacity; conservative 64 MiB assumption if unknown."""
    cap = None
    try:
        cap = int(pltpu.get_tpu_info().vmem_capacity_bytes)
    except Exception:
        cap = None
    if not cap or cap <= 0:
        cap = 64 * _MIB  # v7x has 64 MiB / TensorCore; safe everywhere
    return int(cap * 0.8)


def _block_spec(shape, index_map, *, single_buffer=False):
    """BlockSpec; single_buffer=True requests one pipeline buffer (block never changes)."""
    if single_buffer:
        return pl.BlockSpec(shape, index_map, pipeline_mode=pl.Buffered(1))
    return pl.BlockSpec(shape, index_map)


# ---------------------------------------------------------------------------
# Kernels
# ---------------------------------------------------------------------------

def _mlp_resident_kernel(x_ref, w1_ref, b1_ref, w2_ref, b2_ref, o_ref):
    # x_ref : (TN, Cin)  input dtype | w1/w2: bf16 | b1/b2: f32 | o_ref: (TN, CoutP)
    x = x_ref[...].astype(w1_ref.dtype)                       # bf16 MXU operand
    h = jnp.dot(x, w1_ref[...], preferred_element_type=jnp.float32)
    h = h + b1_ref[...]
    # exact (erf) GELU in f32 -- matches torch.nn.GELU() default
    h = 0.5 * h * (1.0 + lax.erf(h * _INV_SQRT2))
    # dropout p=0.0 -> identity
    h = h.astype(w2_ref.dtype)
    out = jnp.dot(h, w2_ref[...], preferred_element_type=jnp.float32)
    o_ref[...] = (out + b2_ref[...]).astype(o_ref.dtype)


def _mlp_hidden_tiled_kernel(x_ref, w1_ref, b1_ref, w2_ref, b2_ref, o_ref, acc_ref):
    # grid = (token blocks, hidden blocks); hidden axis is the reduction axis.
    k = pl.program_id(1)

    @pl.when(k == 0)
    def _():
        acc_ref[...] = jnp.zeros_like(acc_ref)

    x = x_ref[...].astype(w1_ref.dtype)
    h = jnp.dot(x, w1_ref[...], preferred_element_type=jnp.float32)
    h = h + b1_ref[...]
    h = 0.5 * h * (1.0 + lax.erf(h * _INV_SQRT2))          # GELU(0)=0 -> zero-padded
    h = h.astype(w2_ref.dtype)                               # hidden columns are inert
    acc_ref[...] += jnp.dot(h, w2_ref[...], preferred_element_type=jnp.float32)

    @pl.when(k == pl.num_programs(1) - 1)
    def _():
        o_ref[...] = (acc_ref[...] + b2_ref[...]).astype(o_ref.dtype)


# ---------------------------------------------------------------------------
# Wrapper
# ---------------------------------------------------------------------------

def mlp_pallas(x, w1, b1, w2, b2, *, token_tile=512, hidden_tile=None,
               compute_dtype=jnp.bfloat16, out_dtype=None):
    """x: (..., in_features) channels-last. Returns (..., out_features).

    hidden_tile: force the hidden-dim-streamed path with the given slice width
    (rounded to a multiple of 128). If None, it is enabled automatically only
    when the resident-weight path cannot fit the VMEM budget.
    """
    in_features = x.shape[-1]
    hidden = w1.shape[1]
    out_features = w2.shape[1]
    lead_shape = x.shape[:-1]
    n_tokens = math.prod(lead_shape) if lead_shape else 1

    x2d = x.reshape(n_tokens, in_features)
    out_dt = out_dtype if out_dtype is not None else x.dtype

    # Lane-dense output: pad out_features up to a multiple of 128 (zero cols).
    cout_p = _round_up(out_features, 128)
    if cout_p != out_features:
        w2 = jnp.pad(w2, ((0, 0), (0, cout_p - out_features)))
        b2 = jnp.pad(b2, (0, cout_p - out_features))

    w1c = w1.astype(compute_dtype)
    w2c = w2.astype(compute_dtype)
    b1_2d = b1.reshape(1, hidden).astype(jnp.float32)
    b2_2d = b2.reshape(1, cout_p).astype(jnp.float32)

    isx = jnp.dtype(x.dtype).itemsize
    isc = jnp.dtype(compute_dtype).itemsize
    iso = jnp.dtype(out_dt).itemsize

    # Token tile: multiple of 16 sublanes (bf16 packs 2 rows/sublane), or the
    # full token count when smaller (full-extent blocks are always legal).
    tn = max(16, (int(token_tile) // 16) * 16)
    if n_tokens < tn:
        tn = n_tokens

    budget = _vmem_budget_bytes()

    # Precise per-buffer VMEM accounting (weights single-buffered on path A).
    def _resident_bytes(t):
        return (2 * t * in_features * isx                 # x tile (double-buffered)
                + in_features * hidden * isc              # w1 (1 buffer)
                + hidden * 4                              # b1 (1 buffer, f32)
                + hidden * cout_p * isc                   # w2 (1 buffer)
                + cout_p * 4                              # b2 (1 buffer, f32)
                + 2 * t * cout_p * iso                    # out tile (double-buffered)
                + t * hidden * (4 + isc))                 # f32 h + bf16 copy

    def _tiled_bytes(t, th):
        return (2 * t * in_features * isx
                + 2 * in_features * th * isc              # w1 slice (double-buffered)
                + 2 * th * 4                              # b1 slice
                + 2 * th * cout_p * isc                   # w2 slice
                + cout_p * 4                              # b2 (1 buffer)
                + 2 * t * cout_p * iso
                + t * cout_p * 4                          # f32 accumulator scratch
                + t * th * (4 + isc))                     # f32 h slice + bf16 copy

    if hidden_tile is None:
        # Shrink the token tile first; only stream weights if residency is
        # impossible (streaming re-reads weights once per token block).
        while tn > 64 and _resident_bytes(tn) > budget:
            new_tn = max(64, ((tn // 2) // 16) * 16)
            if new_tn == tn:
                break
            tn = new_tn
        use_hidden = _resident_bytes(tn) > budget
        tk_h = 512
    else:
        use_hidden = True
        tk_h = int(hidden_tile)

    hp = hidden
    if use_hidden:
        tk_h = max(128, (tk_h // 128) * 128)
        hp = _round_up(hidden, tk_h)
        if hp != hidden:
            # Zero padding is exact: GELU(0)=0 and padded w2 rows are zero.
            w1c = jnp.pad(w1c, ((0, 0), (0, hp - hidden)))
            b1_2d = jnp.pad(b1_2d, ((0, 0), (0, hp - hidden)))
            w2c = jnp.pad(w2c, ((0, hp - hidden), (0, 0)))
        while tn > 16 and _tiled_bytes(tn, tk_h) > budget:
            new_tn = max(16, ((tn // 2) // 16) * 16)
            if new_tn == tn:
                break
            tn = new_tn

    cost = pl.CostEstimate(
        flops=2 * n_tokens * (in_features * hidden + hidden * out_features),
        transcendentals=n_tokens * hidden,
        bytes_accessed=(n_tokens * in_features * isx
                        + in_features * hp * isc
                        + hp * cout_p * isc
                        + (hp + cout_p) * 4
                        + n_tokens * cout_p * iso),
    )

    def _call(single_buffer):
        if use_hidden:
            grid = (pl.cdiv(n_tokens, tn), hp // tk_h)
            in_specs = [
                pl.BlockSpec((tn, in_features), lambda i, k: (i, 0)),
                pl.BlockSpec((in_features, tk_h), lambda i, k: (0, k)),
                pl.BlockSpec((1, tk_h), lambda i, k: (0, k)),
                pl.BlockSpec((tk_h, cout_p), lambda i, k: (k, 0)),
                _block_spec((1, cout_p), lambda i, k: (0, 0), single_buffer=single_buffer),
            ]
            out_specs = pl.BlockSpec((tn, cout_p), lambda i, k: (i, 0))
            scratch = [pltpu.VMEM((tn, cout_p), jnp.float32)]
            kernel = _mlp_hidden_tiled_kernel
            dims = ("parallel", "arbitrary")
        else:
            grid = (pl.cdiv(n_tokens, tn),)
            in_specs = [
                pl.BlockSpec((tn, in_features), lambda i: (i, 0)),
                _block_spec((in_features, hidden), lambda i: (0, 0), single_buffer=single_buffer),
                _block_spec((1, hidden), lambda i: (0, 0), single_buffer=single_buffer),
                _block_spec((hidden, cout_p), lambda i: (0, 0), single_buffer=single_buffer),
                _block_spec((1, cout_p), lambda i: (0, 0), single_buffer=single_buffer),
            ]
            out_specs = pl.BlockSpec((tn, cout_p), lambda i: (i, 0))
            scratch = []
            kernel = _mlp_resident_kernel
            dims = ("parallel",)

        return pl.pallas_call(
            kernel,
            out_shape=jax.ShapeDtypeStruct((n_tokens, cout_p), out_dt),
            grid_spec=pltpu.PrefetchScalarGridSpec(
                num_scalar_prefetch=0,
                grid=grid,
                in_specs=in_specs,
                out_specs=out_specs,
                scratch_shapes=scratch,
            ),
            compiler_params=pltpu.CompilerParams(
                dimension_semantics=dims,
                vmem_limit_bytes=int(budget),
            ),
            cost_estimate=cost,
        )(x2d, w1c, b1_2d, w2c, b2_2d)

    try:
        out = _call(True)          # single-buffered resident operands (preferred)
    except Exception:
        out = _call(False)         # safety net: default double buffering

    if cout_p != out_features:
        out = out[:, :out_features]
    return out.reshape(*lead_shape, out_features)


# ---------------------------------------------------------------------------
# Params / reference
# ---------------------------------------------------------------------------

def init_mlp_params(key, in_features, hidden_features, out_features, dtype=jnp.float32):
    """Deterministic init mimicking nn.Linear's uniform(-1/sqrt(fan_in), 1/sqrt(fan_in))."""
    k1, k2, k3, k4 = jax.random.split(key, 4)
    lim1 = 1.0 / math.sqrt(in_features)
    lim2 = 1.0 / math.sqrt(hidden_features)
    # Stored as (in, out) so the kernel does x @ W (PyTorch stores (out, in)).
    w1 = jax.random.uniform(k1, (in_features, hidden_features), dtype, -lim1, lim1)
    b1 = jax.random.uniform(k2, (hidden_features,), dtype, -lim1, lim1)
    w2 = jax.random.uniform(k3, (hidden_features, out_features), dtype, -lim2, lim2)
    b2 = jax.random.uniform(k4, (out_features,), dtype, -lim2, lim2)
    return w1, b1, w2, b2


def mlp_reference(x, w1, b1, w2, b2, compute_dtype=jnp.bfloat16):
    """Pure-JAX reference emulating the kernel's mixed precision (bf16 MXU, f32 acc)."""
    xc = x.astype(compute_dtype)
    h = jnp.dot(xc, w1.astype(compute_dtype), preferred_element_type=jnp.float32) + b1
    h = 0.5 * h * (1.0 + lax.erf(h * _INV_SQRT2))
    hc = h.astype(compute_dtype)
    return jnp.dot(hc, w2.astype(compute_dtype), preferred_element_type=jnp.float32) + b2


# ---------------------------------------------------------------------------
# Self-test
# ---------------------------------------------------------------------------

if __name__ == "__main__":
    key = jax.random.PRNGKey(0)
    kx, kp, kp2 = jax.random.split(key, 3)

    # Small NHWC input consistent with channels_first=False usage.
    B, H, W, C_in = 2, 8, 8, 16
    hidden_features = 32
    out_features = C_in  # module default: out_features = in_features

    x = jax.random.normal(kx, (B, H, W, C_in), jnp.float32)
    w1, b1, w2, b2 = init_mlp_params(kp, C_in, hidden_features, out_features)

    # Path A, single token block.
    y = jax.block_until_ready(mlp_pallas(x, w1, b1, w2, b2))
    # Path A, multi-step grid with a partial last block (128 tokens, tile 48).
    y_tiled = jax.block_until_ready(mlp_pallas(x, w1, b1, w2, b2, token_tile=48))

    y_ref = mlp_reference(x, w1, b1, w2, b2, compute_dtype=jnp.bfloat16)
    y_f32 = mlp_reference(x, w1, b1, w2, b2, compute_dtype=jnp.float32)

    assert y.shape == (B, H, W, out_features)
    assert y_tiled.shape == (B, H, W, out_features)
    assert jnp.allclose(y, y_ref, atol=1e-3, rtol=1e-3)
    assert jnp.allclose(y_tiled, y_ref, atol=1e-3, rtol=1e-3)
    # Loose sanity check against exact f32 module math (bf16 MXU rounding).
    assert jnp.allclose(y, y_f32, atol=5e-2, rtol=5e-2)

    # Path B (hidden-dim streaming + f32 accumulator), forced at a small size:
    # hidden=192 with tk_h=128 -> two hidden blocks, second one zero-padded.
    hidden_b = 192
    w1b, b1b, w2b, b2b = init_mlp_params(kp2, C_in, hidden_b, out_features)
    y_hid = jax.block_until_ready(
        mlp_pallas(x, w1b, b1b, w2b, b2b, token_tile=128, hidden_tile=128))
    y_hid_ref = mlp_reference(x, w1b, b1b, w2b, b2b, compute_dtype=jnp.bfloat16)
    assert y_hid.shape == (B, H, W, out_features)
    assert jnp.allclose(y_hid, y_hid_ref, atol=2e-3, rtol=2e-3)

    print("KERNEL_OK")
</pallas_src>

<mosaic_0001>
module attributes {stable_mosaic.version = 11 : i64} {
  func.func @_mlp_resident_kernel(%arg0: i32, %arg1: memref<128x16xf32, #tpu.memory_space<vmem>>, %arg2: memref<16x32xbf16, #tpu.memory_space<vmem>>, %arg3: memref<1x32xf32, #tpu.memory_space<vmem>>, %arg4: memref<32x128xbf16, #tpu.memory_space<vmem>>, %arg5: memref<1x128xf32, #tpu.memory_space<vmem>>, %arg6: memref<128x128xf32, #tpu.memory_space<vmem>>) attributes {dimension_semantics = [#tpu.dimension_semantics<parallel>], iteration_bounds = array<i64: 1>, scalar_prefetch = 0 : i64, scratch_operands = 0 : i64, tpu.core_type = #tpu.core_type<tc>, window_params = [{transform_indices = @transform_0, window_bounds = array<i64: 128, 16>}, {pipeline_mode = #tpu.pipeline_mode<synchronous>, transform_indices = @transform_1, window_bounds = array<i64: 16, 32>}, {pipeline_mode = #tpu.pipeline_mode<synchronous>, transform_indices = @transform_2, window_bounds = array<i64: 1, 32>}, {pipeline_mode = #tpu.pipeline_mode<synchronous>, transform_indices = @transform_3, window_bounds = array<i64: 32, 128>}, {pipeline_mode = #tpu.pipeline_mode<synchronous>, transform_indices = @transform_4, window_bounds = array<i64: 1, 128>}, {transform_indices = @transform_5, window_bounds = array<i64: 128, 128>}]} {
    %c0 = arith.constant 0 : index
    %c0_0 = arith.constant 0 : index
    %0 = vector.load %arg1[%c0, %c0_0] : memref<128x16xf32, #tpu.memory_space<vmem>>, vector<128x16xf32>
    %1 = arith.truncf %0 : vector<128x16xf32> to vector<128x16xbf16>
    %c0_1 = arith.constant 0 : index
    %c0_2 = arith.constant 0 : index
    %2 = vector.load %arg2[%c0_1, %c0_2] : memref<16x32xbf16, #tpu.memory_space<vmem>>, vector<16x32xbf16>
    %cst = arith.constant dense<0.000000e+00> : vector<128x32xf32>
    %3 = tpu.matmul %1, %2, %cst {dimension_numbers = #tpu.dot_dimension_numbers<[1], [0], [0], [1], [0, 0, 1, 1], [], []>} : vector<128x16xbf16>, vector<16x32xbf16>, vector<128x32xf32> -> vector<128x32xf32>
    %c0_3 = arith.constant 0 : index
    %c0_4 = arith.constant 0 : index
    %4 = vector.load %arg3[%c0_3, %c0_4] : memref<1x32xf32, #tpu.memory_space<vmem>>, vector<1x32xf32>
    %5 = vector.broadcast %4 : vector<1x32xf32> to vector<128x32xf32>
    %6 = arith.addf %3, %5 : vector<128x32xf32>
    %cst_5 = arith.constant 5.000000e-01 : f32
    %7 = vector.broadcast %cst_5 : f32 to vector<128x32xf32>
    %8 = arith.mulf %7, %6 : vector<128x32xf32>
    %cst_6 = arith.constant 0.707106769 : f32
    %9 = vector.broadcast %cst_6 : f32 to vector<128x32xf32>
    %10 = arith.mulf %6, %9 : vector<128x32xf32>
    %11 = math.erf %10 : vector<128x32xf32>
    %cst_7 = arith.constant 1.000000e+00 : f32
    %12 = vector.broadcast %cst_7 : f32 to vector<128x32xf32>
    %13 = arith.addf %12, %11 : vector<128x32xf32>
    %14 = arith.mulf %8, %13 : vector<128x32xf32>
    %15 = arith.truncf %14 : vector<128x32xf32> to vector<128x32xbf16>
    %c0_8 = arith.constant 0 : index
    %c0_9 = arith.constant 0 : index
    %16 = vector.load %arg4[%c0_8, %c0_9] : memref<32x128xbf16, #tpu.memory_space<vmem>>, vector<32x128xbf16>
    %cst_10 = arith.constant dense<0.000000e+00> : vector<128x128xf32>
    %17 = tpu.matmul %15, %16, %cst_10 {dimension_numbers = #tpu.dot_dimension_numbers<[1], [0], [0], [1], [0, 0, 1, 1], [], []>} : vector<128x32xbf16>, vector<32x128xbf16>, vector<128x128xf32> -> vector<128x128xf32>
    %c0_11 = arith.constant 0 : index
    %c0_12 = arith.constant 0 : index
    %18 = vector.load %arg5[%c0_11, %c0_12] : memref<1x128xf32, #tpu.memory_space<vmem>>, vector<1x128xf32>
    %19 = vector.broadcast %18 : vector<1x128xf32> to vector<128x128xf32>
    %20 = arith.addf %17, %19 : vector<128x128xf32>
    %c0_13 = arith.constant 0 : index
    %c0_14 = arith.constant 0 : index
    %21 = vector.load %arg6[%c0_13, %c0_14] : memref<128x128xf32, #tpu.memory_space<vmem>>, vector<128x128xf32>
    tpu.vector_store %arg6[%c0_13, %c0_14], %20 {strides = array<i32>} : memref<128x128xf32, #tpu.memory_space<vmem>>, vector<128x128xf32>,
    return
  }
  func.func @transform_0(%arg0: i32) -> (i32, i32) {
    %c0_i32 = arith.constant 0 : i32
    %c0_i32_0 = arith.constant 0 : i32
    return %arg0, %c0_i32 : i32, i32
  }
  func.func @transform_1(%arg0: i32) -> (i32, i32) {
    %c0_i32 = arith.constant 0 : i32
    %c0_i32_0 = arith.constant 0 : i32
    %c0_i32_1 = arith.constant 0 : i32
    return %c0_i32, %c0_i32_0 : i32, i32
  }
  func.func @transform_2(%arg0: i32) -> (i32, i32) {
    %c0_i32 = arith.constant 0 : i32
    %c0_i32_0 = arith.constant 0 : i32
    %c0_i32_1 = arith.constant 0 : i32
    return %c0_i32, %c0_i32_0 : i32, i32
  }
  func.func @transform_3(%arg0: i32) -> (i32, i32) {
    %c0_i32 = arith.constant 0 : i32
    %c0_i32_0 = arith.constant 0 : i32
    %c0_i32_1 = arith.constant 0 : i32
    return %c0_i32, %c0_i32_0 : i32, i32
  }
  func.func @transform_4(%arg0: i32) -> (i32, i32) {
    %c0_i32 = arith.constant 0 : i32
    %c0_i32_0 = arith.constant 0 : i32
    %c0_i32_1 = arith.constant 0 : i32
    return %c0_i32, %c0_i32_0 : i32, i32
  }
  func.func @transform_5(%arg0: i32) -> (i32, i32) {
    %c0_i32 = arith.constant 0 : i32
    %c0_i32_0 = arith.constant 0 : i32
    return %arg0, %c0_i32 : i32, i32
  }
}

module attributes {stable_mosaic.version = 11 : i64} {
  func.func @_mlp_resident_kernel(%arg0: i32, %arg1: memref<128x16xf32, #tpu.memory_space<vmem>>, %arg2: memref<16x32xbf16, #tpu.memory_space<vmem>>, %arg3: memref<1x32xf32, #tpu.memory_space<vmem>>, %arg4: memref<32x128xbf16, #tpu.memory_space<vmem>>, %arg5: memref<1x128xf32, #tpu.memory_space<vmem>>, %arg6: memref<128x128xf32, #tpu.memory_space<vmem>>) attributes {dimension_semantics = [#tpu.dimension_semantics<parallel>], iteration_bounds = array<i64: 1>, scalar_prefetch = 0 : i64, scratch_operands = 0 : i64, tpu.core_type = #tpu.core_type<tc>, window_params = [{transform_indices = @transform_0, window_bounds = array<i64: 128, 16>}, {pipeline_mode = #tpu.pipeline_mode<synchronous>, transform_indices = @transform_1, window_bounds = array<i64: 16, 32>}, {pipeline_mode = #tpu.pipeline_mode<synchronous>, transform_indices = @transform_2, window_bounds = array<i64: 1, 32>}, {pipeline_mode = #tpu.pipeline_mode<synchronous>, transform_indices = @transform_3, window_bounds = array<i64: 32, 128>}, {pipeline_mode = #tpu.pipeline_mode<synchronous>, transform_indices = @transform_4, window_bounds = array<i64: 1, 128>}, {transform_indices = @transform_5, window_bounds = array<i64: 128, 128>}]} {
    %c0 = arith.constant 0 : index
    %c0_0 = arith.constant 0 : index
    %0 = vector.load %arg1[%c0, %c0_0] : memref<128x16xf32, #tpu.memory_space<vmem>>, vector<128x16xf32>
    %1 = arith.truncf %0 : vector<128x16xf32> to vector<128x16xbf16>
    %c0_1 = arith.constant 0 : index
    %c0_2 = arith.constant 0 : index
    %2 = vector.load %arg2[%c0_1, %c0_2] : memref<16x32xbf16, #tpu.memory_space<vmem>>, vector<16x32xbf16>
    %cst = arith.constant dense<0.000000e+00> : vector<128x32xf32>
    %3 = tpu.matmul %1, %2, %cst {dimension_numbers = #tpu.dot_dimension_numbers<[1], [0], [0], [1], [0, 0, 1, 1], [], []>} : vector<128x16xbf16>, vector<16x32xbf16>, vector<128x32xf32> -> vector<128x32xf32>
    %c0_3 = arith.constant 0 : index
    %c0_4 = arith.constant 0 : index
    %4 = vector.load %arg3[%c0_3, %c0_4] : memref<1x32xf32, #tpu.memory_space<vmem>>, vector<1x32xf32>
    %5 = vector.broadcast %4 : vector<1x32xf32> to vector<128x32xf32>
    %6 = arith.addf %3, %5 : vector<128x32xf32>
    %cst_5 = arith.constant 5.000000e-01 : f32
    %7 = vector.broadcast %cst_5 : f32 to vector<128x32xf32>
    %8 = arith.mulf %7, %6 : vector<128x32xf32>
    %cst_6 = arith.constant 0.707106769 : f32
    %9 = vector.broadcast %cst_6 : f32 to vector<128x32xf32>
    %10 = arith.mulf %6, %9 : vector<128x32xf32>
    %11 = math.erf %10 : vector<128x32xf32>
    %cst_7 = arith.constant 1.000000e+00 : f32
    %12 = vector.broadcast %cst_7 : f32 to vector<128x32xf32>
    %13 = arith.addf %12, %11 : vector<128x32xf32>
    %14 = arith.mulf %8, %13 : vector<128x32xf32>
    %15 = arith.truncf %14 : vector<128x32xf32> to vector<128x32xbf16>
    %c0_8 = arith.constant 0 : index
    %c0_9 = arith.constant 0 : index
    %16 = vector.load %arg4[%c0_8, %c0_9] : memref<32x128xbf16, #tpu.memory_space<vmem>>, vector<32x128xbf16>
    %cst_10 = arith.constant dense<0.000000e+00> : vector<128x128xf32>
    %17 = tpu.matmul %15, %16, %cst_10 {dimension_numbers = #tpu.dot_dimension_numbers<[1], [0], [0], [1], [0, 0, 1, 1], [], []>} : vector<128x32xbf16>, vector<32x128xbf16>, vector<128x128xf32> -> vector<128x128xf32>
    %c0_11 = arith.constant 0 : index
    %c0_12 = arith.constant 0 : index
    %18 = vector.load %arg5[%c0_11, %c0_12] : memref<1x128xf32, #tpu.memory_space<vmem>>, vector<1x128xf32>
    %19 = vector.broadcast %18 : vector<1x128xf32> to vector<128x128xf32>
    %20 = arith.addf %17, %19 : vector<128x128xf32>
    %c0_13 = arith.constant 0 : index
    %c0_14 = arith.constant 0 : index
    %21 = vector.load %arg6[%c0_13, %c0_14] : memref<128x128xf32, #tpu.memory_space<vmem>>, vector<128x128xf32>
    tpu.vector_store %arg6[%c0_13, %c0_14], %20 {strides = array<i32>} : memref<128x128xf32, #tpu.memory_space<vmem>>, vector<128x128xf32>,
    return
  }
  func.func @transform_0(%arg0: i32) -> (i32, i32) {
    %c0_i32 = arith.constant 0 : i32
    %c0_i32_0 = arith.constant 0 : i32
    return %arg0, %c0_i32 : i32, i32
  }
  func.func @transform_1(%arg0: i32) -> (i32, i32) {
    %c0_i32 = arith.constant 0 : i32
    %c0_i32_0 = arith.constant 0 : i32
    %c0_i32_1 = arith.constant 0 : i32
    return %c0_i32, %c0_i32_0 : i32, i32
  }
  func.func @transform_2(%arg0: i32) -> (i32, i32) {
    %c0_i32 = arith.constant 0 : i32
    %c0_i32_0 = arith.constant 0 : i32
    %c0_i32_1 = arith.constant 0 : i32
    return %c0_i32, %c0_i32_0 : i32, i32
  }
  func.func @transform_3(%arg0: i32) -> (i32, i32) {
    %c0_i32 = arith.constant 0 : i32
    %c0_i32_0 = arith.constant 0 : i32
    %c0_i32_1 = arith.constant 0 : i32
    return %c0_i32, %c0_i32_0 : i32, i32
  }
  func.func @transform_4(%arg0: i32) -> (i32, i32) {
    %c0_i32 = arith.constant 0 : i32
    %c0_i32_0 = arith.constant 0 : i32
    %c0_i32_1 = arith.constant 0 : i32
    return %c0_i32, %c0_i32_0 : i32, i32
  }
  func.func @transform_5(%arg0: i32) -> (i32, i32) {
    %c0_i32 = arith.constant 0 : i32
    %c0_i32_0 = arith.constant 0 : i32
    return %arg0, %c0_i32 : i32, i32
  }
}

</mosaic_0001>

<bundles_post_ra>
// kernel: tpu_custom_call.1
= control target key start
LH: loop header
LB: loop body
LE: loop exit
PB: predicated region body
PF: predicated region fallthrough
CT: control target
= control target key end

     0   :  { %vm58_vm0 = vcmask 130048   ;;  %s1979_s0 = inlined_call_operand.vmem [shape: f32[128,16], index: 0, kind: input, shape index: {}]   ;;  %s1980_s1 = inlined_call_operand.vmem [shape: bf16[16,32], index: 1, kind: input, shape index: {}]   ;;  %s1981_s2 = inlined_call_operand.vmem [shape: f32[1,32], index: 2, kind: input, shape index: {}]   ;;  %s1982_s3 = inlined_call_operand.vmem [shape: bf16[32,128], index: 3, kind: input, shape index: {}]   ;;  %s1983_s4 = inlined_call_operand.vmem [shape: f32[1,128], index: 4, kind: input, shape index: {}]   ;;  %s1984_s5 = inlined_call_operand.hbm [shape: f32[128,128], index: 5, kind: output, shape index: {}]  }
   0x1   :  { %v1016_v0 = vld [vmem:[%s1980_s1] sm:$0xff]  ;;  %v23_v2 = vld [vmem:[%s1979_s0 + $0x8] sm:$0xff]  ;;  %v32_v4 = vld [vmem:[%s1979_s0 + $0x50] sm:$0xff] }
   0x2   :  { %v22_v1 = vld [vmem:[%s1979_s0] sm:$0xff]  ;;  %90 = vmatpush.bf16.msra.mxu0 %v1016_v0  ;;  %1019 = vmatpush.bf16.msra.mxu3 %v1016_v0  ;;  %v33_v5 = vld [vmem:[%s1979_s0 + $0x58] sm:$0xff] }
   0x3   :  { %v38_v3 = vpack.c.bf16 %v23_v2, %v22_v1  ;;  %v43_v6 = vpack.c.bf16 %v33_v5, %v32_v4 }
   0x4   :  { %10 = vsyncpa [#allocation3], 0  ;;  %v24_v7 = vld [vmem:[%s1979_s0 + $0x10] sm:$0xff]  ;;  %v25_v8 = vld [vmem:[%s1979_s0 + $0x18] sm:$0xff]  ;;  %s960_s8 = sshll.u32 %s1984_s5, 4  ;;  %s1086_s9 = smov 128   ;;  %s961_s8 = int_to_ptr.hbm [resolvable:$true] %s960_s8 }
   0x5   :  { %976 = vmatmul.msk.bf16.vlgmr.msra.gmra.mxu0 %vm58_vm0, %v38_v3  ;;  %981 = vmatmul.msk.bf16.vlgmr.msra.gmra.mxu3 %vm58_vm0, %v43_v6  ;;  %v34_v9 = vld [vmem:[%s1979_s0 + $0x60] sm:$0xff]  ;;  %v35_v10 = vld [vmem:[%s1979_s0 + $0x68] sm:$0xff]  ;;  %v39_v11 = vpack.c.bf16 %v25_v8, %v24_v7  ;;  %v36_v15 = vld [vmem:[%s1979_s0 + $0x70] sm:$0xff]  ;;  %s1087_s10 = smov 8  }
   0x6   :  { %v44_v12 = vpack.c.bf16 %v35_v10, %v34_v9  ;;  %v26_v13 = vld [vmem:[%s1979_s0 + $0x20] sm:$0xff]  ;;  %v27_v14 = vld [vmem:[%s1979_s0 + $0x28] sm:$0xff]  ;;  %v37_v16 = vld [vmem:[%s1979_s0 + $0x78] sm:$0xff] }
   0x7   :  { %v40_v17 = vpack.c.bf16 %v27_v14, %v26_v13  ;;  %v45_v18 = vpack.c.bf16 %v37_v16, %v36_v15  ;;  %v28_v19 = vld [vmem:[%s1979_s0 + $0x30] sm:$0xff]  ;;  %v29_v20 = vld [vmem:[%s1979_s0 + $0x38] sm:$0xff]  ;;  %v30_v22 = vld [vmem:[%s1979_s0 + $0x40] sm:$0xff] }
   0x8   :  { %v41_v21 = vpack.c.bf16 %v29_v20, %v28_v19  ;;  %v31_v23 = vld [vmem:[%s1979_s0 + $0x48] sm:$0xff]  ;;  %v1180_v26 = vld [vmem:[%s1981_s2] ss:$0 sm:$0xff] }
   0x9   :  { %v42_v24 = vpack.c.bf16 %v31_v23, %v30_v22 }
  0x15   :  { %977 = vmatmul.msk.bf16.gmra.mxu0 %vm58_vm0, %v39_v11  ;;  %982 = vmatmul.msk.bf16.gmra.mxu3 %vm58_vm0, %v44_v12 }
  0x25   :  { %978 = vmatmul.msk.bf16.gmra.mxu0 %vm58_vm0, %v40_v17  ;;  %983 = vmatmul.msk.bf16.gmra.mxu3 %vm58_vm0, %v45_v18 }
  0x35   :  { %979 = vmatmul.msk.bf16.gmra.mxu0 %vm58_vm0, %v41_v21 }
  0x45   :  { %980 = vmatmul.msk.bf16.gmra.mxu0 %vm58_vm0, %v42_v24 }
  0x82   :  { %v92_v25 = vpop.f32.mrf.mxu0 }
  0x83   :  { %v1183_v28 = vadd.f32 %v1180_v26, %v92_v25 }
  0x85   :  { %v1186_v29 = vmul.f32 0.70710677, %v1183_v28 }
  0x87   :  { %v164_v30 = vmul.f32 %v1186_v29, %v1186_v29 }
  0x88   :  { %v117_v61 = vpop.f32.mrf.mxu3 }
  0x89   :  { %v1193_v33 = vmin.f32 %v164_v30, 16.0  ;;  %v1231_v62 = vadd.f32 %v1180_v26, %v117_v61 }
  0x8a   :  { %v94_v27 = vpop.f32.mrf.mxu0 }
  0x8b   :  { %v1191_v31 = vadd.f32 %v1180_v26, %v94_v27  ;;  %v177_v35 = vmul.f32 3.8918573e-05, %v1193_v33  ;;  %v166_v59 = vmul.f32 2.1237322e-06, %v1193_v33  ;;  %v1241_v7 = vmul.f32 0.70710677, %v1231_v62 }
  0x8d   :  { %v1196_v34 = vmul.f32 0.70710677, %v1191_v31  ;;  %v178_v39 = vadd.f32 0.001143296, %v177_v35  ;;  %v167_v3 = vadd.f32 0.00028619796, %v166_v59  ;;  %v564_v16 = vmul.f32 %v1241_v7, %v1241_v7 }
  0x8f   :  { %v204_v36 = vmul.f32 %v1196_v34, %v1196_v34  ;;  %v179_v43 = vmul.f32 %v178_v39, %v1193_v33  ;;  %v168_v13 = vmul.f32 %v167_v3, %v1193_v33  ;;  %v1263_v27 = vmin.f32 %v564_v16, 16.0 }
  0x91   :  { %v1204_v40 = vmin.f32 %v204_v36, 16.0  ;;  %v180_v47 = vadd.f32 0.014752088, %v179_v43  ;;  %v169_v23 = vadd.f32 0.0036580483, %v168_v13 }
  0x92   :  { %v97_v32 = vpop.f32.mrf.mxu0 }
  0x93   :  { %v1202_v37 = vadd.f32 %v1180_v26, %v97_v32  ;;  %v217_v44 = vmul.f32 3.8918573e-05, %v1204_v40  ;;  %v181_v51 = vmul.f32 %v180_v47, %v1193_v33  ;;  %v206_v4 = vmul.f32 2.1237322e-06, %v1204_v40 }
  0x94   :  { %v170_v43 = vmul.f32 %v169_v23, %v1193_v33  ;;  %v577_v47 = vmul.f32 3.8918573e-05, %v1263_v27 }
  0x95   :  { %v1207_v41 = vmul.f32 0.70710677, %v1202_v37  ;;  %v218_v48 = vadd.f32 0.001143296, %v217_v44  ;;  %v182_v56 = vadd.f32 0.112945676, %v181_v51 }
  0x96   :  { %v207_v14 = vadd.f32 0.00028619796, %v206_v4 }
  0x97   :  { %v244_v45 = vmul.f32 %v1207_v41, %v1207_v41  ;;  %v219_v52 = vmul.f32 %v218_v48, %v1204_v40  ;;  %v183_v63 = vmul.f32 %v182_v56, %v1193_v33 }
  0x98   :  { %v208_v24 = vmul.f32 %v207_v14, %v1204_v40 }
  0x99   :  { %v1219_v49 = vmin.f32 %v244_v45, 16.0  ;;  %v220_v57 = vadd.f32 0.014752088, %v219_v52  ;;  %v184_v8 = vadd.f32 0.4994258, %v183_v63 }
  0x9a   :  { %v99_v38 = vpop.f32.mrf.mxu0  ;;  %v209_v44 = vadd.f32 0.0036580483, %v208_v24 }
  0x9b   :  { %v1210_v42 = vadd.f32 %v1180_v26, %v99_v38  ;;  %v257_v54 = vmul.f32 3.8918573e-05, %v1219_v49  ;;  %v221_v0 = vmul.f32 %v220_v57, %v1204_v40  ;;  %v185_v17 = vmul.f32 %v184_v8, %v1193_v33 }
  0x9c   :  { %v246_v19 = vmul.f32 2.1237322e-06, %v1219_v49  ;;  %v210_v56 = vmul.f32 %v209_v44, %v1204_v40  ;;  %v1018_v44 = vld [vmem:[%s1982_s3 + $0x8] sm:$0xff] }
  0x9d   :  { %v1217_v46 = vmul.f32 0.70710677, %v1210_v42  ;;  %v258_v58 = vadd.f32 0.001143296, %v257_v54  ;;  %v222_v9 = vadd.f32 0.112945676, %v221_v0  ;;  %895 = vmatpush.bf16.msra.mxu1 %v1018_v44  ;;  %1020 = vmatpush.bf16.msra.mxu2 %v1018_v44 }
  0x9e   :  { %v1265_v30 = vadd.f32 1.0, %v185_v17  ;;  %v247_v35 = vadd.f32 0.00028619796, %v246_v19  ;;  %v171_v54 = vadd.f32 0.05243302, %v170_v43 }
  0x9f   :  { %v284_v50 = vmul.f32 %v1217_v46, %v1217_v46  ;;  %v259_v1 = vmul.f32 %v258_v58, %v1219_v49  ;;  %v223_v18 = vmul.f32 %v222_v9, %v1204_v40  ;;  %v578_v58 = vadd.f32 0.001143296, %v577_v47 }
  0xa0   :  { %1027 = vrcp.f32 %v1265_v30  ;;  %v172_v4 = vmul.f32 %v171_v54, %v1193_v33  ;;  %vm192_vm2 = vweird.f32 %v1265_v30 }
  0xa1   :  { %v1226_v55 = vmin.f32 %v284_v50, 16.0  ;;  %v260_v10 = vadd.f32 0.014752088, %v259_v1  ;;  %v224_v32 = vadd.f32 0.4994258, %v223_v18  ;;  %v248_v50 = vmul.f32 %v247_v35, %v1219_v49 }
  0xa2   :  { %v102_v53 = vpop.f32.mrf.mxu0  ;;  %v579_v8 = vmul.f32 %v578_v58, %v1263_v27  ;;  %v173_v18 = vadd.f32 0.18741608, %v172_v4  ;;  %v566_v35 = vmul.f32 2.1237322e-06, %v1263_v27 }
  0xa3   :  { %v297_v60 = vmul.f32 3.8918573e-05, %v1226_v55  ;;  %v1237_v2 = vadd.f32 %v1180_v26, %v102_v53  ;;  %v261_v20 = vmul.f32 %v260_v10, %v1219_v49  ;;  %v225_v48 = vmul.f32 %v224_v32, %v1204_v40 }
  0xa4   :  { %v286_v13 = vmul.f32 2.1237322e-06, %v1226_v55  ;;  %v567_v58 = vadd.f32 0.00028619796, %v566_v35 }
  0xa5   :  { %v298_v5 = vadd.f32 0.001143296, %v297_v60  ;;  %v1244_v11 = vmul.f32 0.70710677, %v1237_v2  ;;  %v262_v36 = vadd.f32 0.112945676, %v261_v20 }
  0xa6   :  { %v1282_v59 = vadd.f32 1.0, %v225_v48  ;;  %v249_v60 = vadd.f32 0.0036580483, %v248_v50  ;;  %v1285_v3 = vpop.eup %1027  ;;  %v287_v32 = vadd.f32 0.00028619796, %v286_v13 }
  0xa7   :  { %v299_v15 = vmul.f32 %v298_v5, %v1226_v55  ;;  %v324_v21 = vmul.f32 %v1244_v11, %v1244_v11  ;;  %v263_v51 = vmul.f32 %v262_v36, %v1219_v49  ;;  %v211_v5 = vadd.f32 0.05243302, %v210_v56 }
  0xa8   :  { %v250_v10 = vmul.f32 %v249_v60, %v1219_v49  ;;  %1029 = vrcp.f32 %v1282_v59  ;;  %vm193_vm1 = vweird.f32 %v1285_v3  ;;  %vm232_vm5 = vweird.f32 %v1282_v59 }
  0xa9   :  { %v300_v25 = vadd.f32 0.014752088, %v299_v15  ;;  %v1267_v38 = vmin.f32 %v324_v21, 16.0  ;;  %v264_v63 = vadd.f32 0.4994258, %v263_v51  ;;  %v188_v15 = vmul.f32 %v1285_v3, %v1265_v30  ;;  %vm1366_vm4 = vmor %vm192_vm2, %vm193_vm1 }
  0xaa   :  { %v104_v6 = vpop.f32.mrf.mxu0  ;;  %v212_v19 = vmul.f32 %v211_v5, %v1204_v40  ;;  %v580_v21 = vadd.f32 0.014752088, %v579_v8  ;;  %v1316_v51 = vmul.f32 0.5, %v1183_v28  ;;  %v198_v8 = vand.u32 2147483648, %v1265_v30 }
  0xab   :  { %v1247_v12 = vadd.f32 %v1180_v26, %v104_v6  ;;  %v301_v45 = vmul.f32 %v300_v25, %v1226_v55  ;;  %v337_v52 = vmul.f32 3.8918573e-05, %v1267_v38  ;;  %v265_v16 = vmul.f32 %v264_v63, %v1219_v49  ;;  %v119_v63 = vpop.f32.mrf.mxu3 }
  0xac   :  { %v251_v25 = vadd.f32 0.05243302, %v250_v10  ;;  %v189_v36 = vsub.f32 1.0, %v188_v15  ;;  %v213_v47 = vadd.f32 0.18741608, %v212_v19  ;;  %v581_v60 = vmul.f32 %v580_v21, %v1263_v27 }
  0xad   :  { %v1260_v22 = vmul.f32 0.70710677, %v1247_v12  ;;  %v302_v57 = vadd.f32 0.112945676, %v301_v45  ;;  %v338_v0 = vadd.f32 0.001143296, %v337_v52  ;;  %v174_v45 = vmul.f32 %v173_v18, %v1193_v33 }
  0xae   :  { %v1313_v50 = vpop.eup %1029  ;;  %v1319_v52 = vmul.f32 0.5, %v1191_v31  ;;  %v252_v33 = vmul.f32 %v251_v25, %v1219_v49  ;;  %v190_v28 = vmul.f32 %v1285_v3, %v189_v36  ;;  %v288_v31 = vmul.f32 %v287_v32, %v1226_v55 }
  0xaf   :  { %v364_v39 = vmul.f32 %v1260_v22, %v1260_v22  ;;  %v303_v6 = vmul.f32 %v302_v57, %v1226_v55  ;;  %v339_v17 = vmul.f32 %v338_v0, %v1267_v38  ;;  %v1324_v57 = vmul.f32 0.5, %v1202_v37  ;;  %v1017_v0 = vld [vmem:[%s1982_s3] sm:$0xff] }
  0xb0   :  { %v175_v37 = vadd.f32 1.1283791, %v174_v45  ;;  %v228_v4 = vmul.f32 %v1313_v50, %v1282_v59  ;;  %896 = vmatpush.bf16.msra.mxu1 %v1017_v0  ;;  %1021 = vmatpush.bf16.msra.mxu2 %v1017_v0  ;;  %v1351_v15 = vadd.f32 %v1180_v26, %v119_v63  ;;  %v289_v18 = vadd.f32 0.0036580483, %v288_v31 }
  0xb1   :  { %v1279_v53 = vmin.f32 %v364_v39, 16.0  ;;  %v304_v20 = vadd.f32 0.4994258, %v303_v6  ;;  %v1306_v39 = vadd.f32 1.0, %v265_v16  ;;  %v340_v43 = vadd.f32 0.014752088, %v339_v17 }
  0xb2   :  { %v107_v61 = vpop.f32.mrf.mxu0  ;;  %v196_v6 = vand.u32 2147483647, %v1265_v30  ;;  %v191_v16 = vadd.f32 %v1285_v3, %v190_v28  ;;  %v253_v17 = vadd.f32 0.18741608, %v252_v33  ;;  %v229_v21 = vsub.f32 1.0, %v228_v4 }
  0xb3   :  { %v377_v1 = vmul.f32 3.8918573e-05, %v1279_v53  ;;  %v1291_v9 = vadd.f32 %v1180_v26, %v107_v61  ;;  %v305_v48 = vmul.f32 %v304_v20, %v1226_v55  ;;  %1031 = vrcp.f32 %v1306_v39 }
  0xb4   :  { %v341_v61 = vmul.f32 %v340_v43, %v1267_v38  ;;  %vm1358_vm3 = vcmp.eq.f32.partialorder %v196_v6, 8.507059e+37  ;;  %v199_v25 = vor.u32 1.1754944e-38, %v198_v8  ;;  %v176_v36 = vmul.f32 %v175_v37, %v1186_v29 }
  0xb5   :  { %v378_v14 = vadd.f32 0.001143296, %v377_v1  ;;  %v1303_v24 = vmul.f32 0.70710677, %v1291_v9  ;;  %v214_v1 = vmul.f32 %v213_v47, %v1204_v40  ;;  %v1338_v5 = vadd.f32 1.0, %v305_v48 }
  0xb6   :  { %v568_v40 = vmul.f32 %v567_v58, %v1263_v27  ;;  %v342_v19 = vadd.f32 0.112945676, %v341_v61  ;;  %v236_v43 = vand.u32 2147483647, %v1282_v59  ;;  %v326_v45 = vmul.f32 2.1237322e-06, %v1267_v38 }
  0xb7   :  { %v379_v23 = vmul.f32 %v378_v14, %v1279_v53  ;;  %v404_v56 = vmul.f32 %v1303_v24, %v1303_v24  ;;  %v1347_v14 = vmul.f32 0.5, %v1210_v42  ;;  %v215_v20 = vadd.f32 1.1283791, %v214_v1 }
  0xb8   :  { %1033 = vrcp.f32 %v1338_v5  ;;  %v569_v44 = vadd.f32 0.0036580483, %v568_v40  ;;  %v195_v47 = vsel %vm1366_vm4, %v1285_v3, %v191_v16  ;;  %v254_v48 = vmul.f32 %v253_v17, %v1219_v49 }
  0xb9   :  { %v380_v54 = vadd.f32 0.014752088, %v379_v23  ;;  %v1343_v13 = vmin.f32 %v404_v56, 16.0  ;;  %v1356_v23 = vpop.eup %1031  ;;  %v343_v29 = vmul.f32 %v342_v19, %v1267_v38  ;;  %v1379_v56 = vmul.f32 %v215_v20, %v1196_v34 }
  0xba   :  { %v230_v33 = vmul.f32 %v1313_v50, %v229_v21  ;;  %v268_v58 = vmul.f32 %v1356_v23, %v1306_v39  ;;  %v582_v28 = vadd.f32 0.112945676, %v581_v60  ;;  %v238_v31 = vand.u32 2147483648, %v1282_v59 }
  0xbb   :  { %v381_v10 = vmul.f32 %v380_v54, %v1279_v53  ;;  %v417_v35 = vmul.f32 3.8918573e-05, %v1343_v13  ;;  %v290_v54 = vmul.f32 %v289_v18, %v1226_v55  ;;  %v200_v63 = vsel %vm1358_vm3, %v199_v25, %v195_v47 }
  0xbc   :  { %vm1391_vm6 = vcmp.eq.f32.partialorder %v236_v43, 8.507059e+37  ;;  %v570_v0 = vmul.f32 %v569_v44, %v1263_v27  ;;  %v327_v37 = vadd.f32 0.00028619796, %v326_v45  ;;  %vm233_vm7 = vweird.f32 %v1313_v50 }
  0xbd   :  { %v382_v32 = vadd.f32 0.112945676, %v381_v10  ;;  %v418_v49 = vadd.f32 0.001143296, %v417_v35  ;;  %v255_v60 = vadd.f32 1.1283791, %v254_v48  ;;  %v231_v6 = vadd.f32 %v1313_v50, %v230_v33  ;;  %vm1414_vm8 = vmor %vm232_vm5, %vm233_vm7 }
  0xbe   :  { %v1387_v61 = vpop.eup %1033  ;;  %v291_v1 = vadd.f32 0.05243302, %v290_v54  ;;  %v344_v4 = vadd.f32 0.4994258, %v343_v29  ;;  %v269_v8 = vsub.f32 1.0, %v268_v58  ;;  %v583_v17 = vmul.f32 %v582_v28, %v1263_v27  ;;  %v109_v29 = vpop.f32.mrf.mxu0 }
  0xbf   :  { %v383_v3 = vmul.f32 %v382_v32, %v1279_v53  ;;  %v1399_v10 = vmul.f32 0.70710677, %v1351_v15  ;;  %v366_v40 = vmul.f32 2.1237322e-06, %v1279_v53  ;;  %v308_v16 = vmul.f32 %v1387_v61, %v1338_v5 }
  0xc0   :  { %v419_v19 = vmul.f32 %v418_v49, %v1343_v13  ;;  %v201_v20 = vmul.f32 %v200_v63, %v176_v36  ;;  %v239_v21 = vor.u32 1.1754944e-38, %v238_v31  ;;  %v1407_v42 = vmul.f32 0.5, %v1237_v2 }
  0xc1   :  { %v384_v18 = vadd.f32 0.4994258, %v383_v3  ;;  %v328_v25 = vmul.f32 %v327_v37, %v1267_v38  ;;  %v1419_v35 = vmul.f32 %v255_v60, %v1207_v41  ;;  %v292_v30 = vmul.f32 %v291_v1, %v1226_v55 }
  0xc2   :  { %v571_v36 = vadd.f32 0.05243302, %v570_v0  ;;  %v345_v43 = vmul.f32 %v344_v4, %v1267_v38  ;;  %v235_v2 = vsel %vm1414_vm8, %v1313_v50, %v231_v6  ;;  %v270_v44 = vmul.f32 %v1356_v23, %v269_v8 }
  0xc3   :  { %v604_v59 = vmul.f32 %v1399_v10, %v1399_v10  ;;  %v367_v45 = vadd.f32 0.00028619796, %v366_v40  ;;  %v309_v47 = vsub.f32 1.0, %v308_v16  ;;  %v584_v48 = vadd.f32 0.4994258, %v583_v17 }
  0xc4   :  { %v385_v41 = vmul.f32 %v384_v18, %v1279_v53  ;;  %v420_v54 = vadd.f32 0.014752088, %v419_v19  ;;  %v984_v33 = vclamps-f32 %v201_v20, 1.0  ;;  %v276_v58 = vand.u32 2147483647, %v1306_v39 }
  0xc5   :  { %v278_v28 = vand.u32 2147483648, %v1306_v39  ;;  %v329_v31 = vadd.f32 0.0036580483, %v328_v25  ;;  %v240_v50 = vsel %vm1391_vm6, %v239_v21, %v235_v2  ;;  %vm273_vm9 = vweird.f32 %v1356_v23 }
  0xc6   :  { %v293_v3 = vadd.f32 0.18741608, %v292_v30  ;;  %v1435_v49 = vadd.f32 1.0, %v345_v43  ;;  %v271_v63 = vadd.f32 %v1356_v23, %v270_v44  ;;  %v1438_v0 = vmin.f32 %v604_v59, 16.0  ;;  %v122_v59 = vpop.f32.mrf.mxu3 }
  0xc7   :  { %v368_v37 = vmul.f32 %v367_v45, %v1279_v53  ;;  %v1442_v60 = vadd.f32 %v1180_v26, %v109_v29  ;;  %v310_v1 = vmul.f32 %v1387_v61, %v309_v47  ;;  %v1446_v4 = vmul.f32 %v571_v36, %v1263_v27 }
  0xc8   :  { %v1448_v34 = vadd.f32 1.0, %v385_v41  ;;  %v421_v6 = vmul.f32 %v420_v54, %v1343_v13  ;;  %v804_v8 = vadd.f32 1.0, %v984_v33  ;;  %vm272_vm10 = vweird.f32 %v1306_v39 }
  0xc9   :  { %vm1452_vm11 = vcmp.eq.f32.partialorder %v276_v58, 8.507059e+37  ;;  %v330_v16 = vmul.f32 %v329_v31, %v1267_v38  ;;  %v241_v17 = vmul.f32 %v240_v50, %v1379_v56  ;;  %vm1460_vm12 = vmor %vm272_vm10, %vm273_vm9  ;;  %v279_v19 = vor.u32 1.1754944e-38, %v278_v28 }
  0xca   :  { %v294_v20 = vmul.f32 %v293_v3, %v1226_v55  ;;  %1035 = vrcp.f32 %v1435_v49  ;;  %v275_v39 = vsel %vm1460_vm12, %v1356_v23, %v271_v63  ;;  %v617_v21 = vmul.f32 3.8918573e-05, %v1438_v0 }
  0xcb   :  { %v369_v25 = vadd.f32 0.0036580483, %v368_v37  ;;  %v1471_v56 = vmul.f32 0.70710677, %v1442_v60  ;;  %v311_v32 = vadd.f32 %v1387_v61, %v310_v1  ;;  %vm313_vm13 = vweird.f32 %v1387_v61 }
  0xcc   :  { %1037 = vrcp.f32 %v1448_v34  ;;  %v422_v30 = vadd.f32 0.112945676, %v421_v6  ;;  %v316_v55 = vand.u32 2147483647, %v1338_v5  ;;  %v318_v36 = vand.u32 2147483648, %v1338_v5 }
  0xcd   :  { %v331_v43 = vadd.f32 0.05243302, %v330_v16  ;;  %v444_v23 = vmul.f32 %v1471_v56, %v1471_v56  ;;  %v280_v2 = vsel %vm1452_vm11, %v279_v19, %v275_v39  ;;  %vm312_vm14 = vweird.f32 %v1338_v5 }
  0xce   :  { %v585_v44 = vmul.f32 %v584_v48, %v1263_v27  ;;  %v406_v45 = vmul.f32 2.1237322e-06, %v1343_v13  ;;  %v1486_v47 = vmul.f32 %v804_v8, %v1316_v51  ;;  %vm1488_vm15 = vmor %vm312_vm14, %vm313_vm13  ;;  %v618_v54 = vadd.f32 0.001143296, %v617_v21 }
  0xcf   :  { %v370_v29 = vmul.f32 %v369_v25, %v1279_v53  ;;  %v1493_v33 = vmin.f32 %v444_v23, 16.0  ;;  %v985_v5 = vclamps-f32 %v241_v17, 1.0  ;;  %v295_v28 = vadd.f32 1.1283791, %v294_v20 }
  0xd0   :  { %v1495_v58 = vpop.eup %1035  ;;  %v315_v48 = vsel %vm1488_vm15, %v1387_v61, %v311_v32  ;;  %v423_v51 = vmul.f32 %v422_v30, %v1343_v13  ;;  %v281_v31 = vmul.f32 %v280_v2, %v1419_v35  ;;  %vm317_vm0 = vcmp.eq.f32.partialorder %v316_v55, 8.507059e+37 }
  0xd1   :  { %v319_v50 = vor.u32 1.1754944e-38, %v318_v36  ;;  %v332_v3 = vmul.f32 %v331_v43, %v1267_v38  ;;  %v606_v37 = vmul.f32 2.1237322e-06, %v1438_v0  ;;  %v1507_v1 = vadd.f32 %v1180_v26, %v122_v59 }
  0xd2   :  { %v1503_v63 = vpop.eup %1037  ;;  %v407_v6 = vadd.f32 0.00028619796, %v406_v45  ;;  %v457_v8 = vmul.f32 3.8918573e-05, %v1493_v33  ;;  %v348_v61 = vmul.f32 %v1495_v58, %v1435_v49  ;;  %v619_v35 = vmul.f32 %v618_v54, %v1438_v0  ;;  %v124_v54 = vpop.f32.mrf.mxu3 }
  0xd3   :  { %v320_v40 = vsel %vm317_vm0, %v319_v50, %v315_v48  ;;  %v371_v16 = vadd.f32 0.05243302, %v370_v29  ;;  %v296_v17 = vmul.f32 %v295_v28, %v1217_v46  ;;  %v424_v18 = vadd.f32 0.4994258, %v423_v51 }
  0xd4   :  { %v446_v19 = vmul.f32 2.1237322e-06, %v1493_v33  ;;  %v458_v20 = vadd.f32 0.001143296, %v457_v8  ;;  %v805_v39 = vadd.f32 1.0, %v985_v5  ;;  %v986_v21 = vclamps-f32 %v281_v31, 1.0 }
  0xd5   :  { %v333_v25 = vadd.f32 0.18741608, %v332_v3  ;;  %v388_v32 = vmul.f32 %v1503_v63, %v1448_v34  ;;  %v321_v30 = vmul.f32 %v320_v40, %v296_v17  ;;  %v607_v55 = vadd.f32 0.00028619796, %v606_v37 }
  0xd6   :  { %v408_v36 = vmul.f32 %v407_v6, %v1343_v13  ;;  %v459_v43 = vmul.f32 %v458_v20, %v1493_v33  ;;  %v1519_v23 = vadd.f32 1.0, %v585_v44  ;;  %v349_v2 = vsub.f32 1.0, %v348_v61  ;;  %v112_v61 = vpop.f32.mrf.mxu0 }
  0xd7   :  { %v620_v46 = vadd.f32 0.014752088, %v619_v35  ;;  %v1522_v59 = vmul.f32 0.70710677, %v1507_v1  ;;  %v372_v45 = vmul.f32 %v371_v16, %v1279_v53  ;;  %v425_v41 = vmul.f32 %v424_v18, %v1343_v13 }
  0xd8   :  { %v447_v29 = vadd.f32 0.00028619796, %v446_v19  ;;  %v460_v5 = vadd.f32 0.014752088, %v459_v43  ;;  %v821_v28 = vmul.f32 %v805_v39, %v1319_v52  ;;  %v1527_v48 = vadd.f32 1.0, %v986_v21 }
  0xd9   :  { %v334_v51 = vmul.f32 %v333_v25, %v1267_v38  ;;  %v389_v44 = vsub.f32 1.0, %v388_v32  ;;  %v987_v31 = vclamps-f32 %v321_v30, 1.0  ;;  %v1531_v50 = vmul.f32 %v607_v55, %v1438_v0 }
  0xda   :  { %v409_v3 = vadd.f32 0.0036580483, %v408_v36  ;;  %v461_v37 = vmul.f32 %v460_v5, %v1493_v33  ;;  %v350_v6 = vmul.f32 %v1495_v58, %v349_v2  ;;  %v621_v8 = vmul.f32 %v620_v46, %v1438_v0 }
  0xdb   :  { %v644_v40 = vmul.f32 %v1522_v59, %v1522_v59  ;;  %v1539_v52 = vadd.f32 %v1180_v26, %v124_v54  ;;  %v373_v38 = vadd.f32 0.18741608, %v372_v45  ;;  %v1541_v35 = vadd.f32 1.0, %v425_v41 }
  0xdc   :  { %v448_v16 = vmul.f32 %v447_v29, %v1493_v33  ;;  %v462_v17 = vadd.f32 0.112945676, %v461_v37  ;;  %v335_v18 = vadd.f32 1.1283791, %v334_v51  ;;  %vm352_vm1 = vweird.f32 %v1435_v49 }
  0xdd   :  { %v356_v19 = vand.u32 2147483647, %v1435_v49  ;;  %v390_v20 = vmul.f32 %v1503_v63, %v389_v44  ;;  %v358_v39 = vand.u32 2147483648, %v1435_v49  ;;  %v410_v21 = vmul.f32 %v409_v3, %v1343_v13 }
  0xde   :  { %v1550_v25 = vadd.f32 %v1180_v26, %v112_v61  ;;  %v836_v32 = vpack.c.bf16 %v821_v28, %v1486_v47  ;;  %v351_v30 = vadd.f32 %v1495_v58, %v350_v6  ;;  %vm353_vm2 = vweird.f32 %v1495_v58  ;;  %v114_v54 = vpop.f32.mrf.mxu0 }
  0xdf   :  { %v1555_v55 = vmin.f32 %v644_v40, 16.0  ;;  %v463_v36 = vmul.f32 %v462_v17, %v1493_v33  ;;  %v374_v43 = vmul.f32 %v373_v38, %v1279_v53  ;;  %1039 = vrcp.f32 %v1541_v35  ;;  %vm1567_vm5 = vmor %vm352_vm1, %vm353_vm2 }
  0xe0   :  { %v1561_v2 = vmul.f32 0.70710677, %v1539_v52  ;;  %v449_v46 = vadd.f32 0.0036580483, %v448_v16  ;;  %v391_v45 = vadd.f32 %v1503_v63, %v390_v20  ;;  %vm393_vm3 = vweird.f32 %v1503_v63  ;;  %v127_v20 = vpop.f32.mrf.mxu3 }
  0xe1   :  { %v464_v47 = vadd.f32 0.4994258, %v463_v36  ;;  %vm864_vm4 = vcmask 261120   ;;  %v807_v41 = vadd.f32 1.0, %v987_v31  ;;  %v398_v53 = vand.u32 2147483648, %v1448_v34 }
  0xe2   :  { %v411_v29 = vadd.f32 0.05243302, %v410_v21  ;;  %v1573_v5 = vmul.f32 0.70710677, %v1550_v25  ;;  %1008 = vmatmul.msk.bf16.vlgmr.msra.gmra.mxu1 %vm864_vm4, %v836_v32  ;;  %v355_v28 = vsel %vm1567_vm5, %v1495_v58, %v351_v30  ;;  %vm392_vm6 = vweird.f32 %v1448_v34 }
  0xe3   :  { %v396_v49 = vand.u32 2147483647, %v1448_v34  ;;  %v465_v51 = vmul.f32 %v464_v47, %v1493_v33  ;;  %vm357_vm7 = vcmp.eq.f32.partialorder %v356_v19, 8.507059e+37  ;;  %v359_v44 = vor.u32 1.1754944e-38, %v358_v39  ;;  %vm1584_vm8 = vmor %vm392_vm6, %vm393_vm3 }
  0xe4   :  { %v657_v3 = vmul.f32 3.8918573e-05, %v1555_v55  ;;  %v450_v37 = vmul.f32 %v449_v46, %v1493_v33  ;;  %v375_v6 = vadd.f32 1.1283791, %v374_v43  ;;  %v395_v58 = vsel %vm1584_vm8, %v1503_v63, %v391_v45 }
  0xe5   :  { %v1593_v34 = vadd.f32 1.0, %v465_v51  ;;  %v484_v40 = vmul.f32 %v1573_v5, %v1573_v5  ;;  %v1597_v61 = vpop.eup %1039  ;;  %v360_v38 = vsel %vm357_vm7, %v359_v44, %v355_v28  ;;  %v399_v16 = vor.u32 1.1754944e-38, %v398_v53 }
  0xe6   :  { %v412_v17 = vmul.f32 %v411_v29, %v1343_v13  ;;  %v684_v19 = vmul.f32 %v1561_v2, %v1561_v2  ;;  %v336_v39 = vmul.f32 %v335_v18, %v1244_v11  ;;  %v622_v21 = vadd.f32 0.112945676, %v621_v8 }
  0xe7   :  { %vm397_vm9 = vcmp.eq.f32.partialorder %v396_v49, 8.507059e+37  ;;  %1041 = vrcp.f32 %v1593_v34  ;;  %v658_v32 = vadd.f32 0.001143296, %v657_v3  ;;  %v451_v30 = vadd.f32 0.05243302, %v450_v37 }
  0xe8   :  { %v400_v63 = vsel %vm397_vm9, %v399_v16, %v395_v58  ;;  %v1604_v36 = vmin.f32 %v484_v40, 16.0  ;;  %v1607_v43 = vadd.f32 0.18741608, %v1446_v4  ;;  %v361_v46 = vmul.f32 %v360_v38, %v336_v39 }
  0xe9   :  { %v376_v45 = vmul.f32 %v375_v6, %v1260_v22  ;;  %v428_v47 = vmul.f32 %v1597_v61, %v1541_v35  ;;  %v823_v11 = vmul.f32 %v807_v41, %v1347_v14  ;;  %1043 = vrcp.f32 %v1519_v23 }
  0xea   :  { %v413_v8 = vadd.f32 0.18741608, %v412_v17  ;;  %v1614_v18 = vmin.f32 %v684_v19, 16.0  ;;  %v609_v53 = vadd.f32 0.0036580483, %v1531_v50  ;;  %v623_v29 = vmul.f32 %v622_v21, %v1438_v0  ;;  %v129_v21 = vpop.f32.mrf.mxu3 }
  0xeb   :  { %v401_v4 = vmul.f32 %v400_v63, %v376_v45  ;;  %v497_v28 = vmul.f32 3.8918573e-05, %v1604_v36  ;;  %v822_v22 = vmul.f32 %v1527_v48, %v1324_v57  ;;  %v137_v49 = vmul.f32 0.5, %v1247_v12 }
  0xec   :  { %v659_v14 = vmul.f32 %v658_v32, %v1555_v55  ;;  %v452_v41 = vmul.f32 %v451_v30, %v1493_v33  ;;  %v988_v44 = vclamps-f32 %v361_v46, 1.0  ;;  %v429_v31 = vsub.f32 1.0, %v428_v47 }
  0xed   :  { %v1624_v51 = vpop.eup %1041  ;;  %v498_v3 = vadd.f32 0.001143296, %v497_v28  ;;  %v1627_v50 = vadd.f32 %v1180_v26, %v114_v54  ;;  %v414_v37 = vmul.f32 %v413_v8, %v1343_v13  ;;  %v697_v6 = vmul.f32 3.8918573e-05, %v1614_v18 }
  0xee   :  { %v468_v57 = vmul.f32 %v1624_v51, %v1593_v34  ;;  %v837_v12 = vpack.c.bf16 %v823_v11, %v822_v22  ;;  %v1634_v48 = vmul.f32 %v609_v53, %v1438_v0  ;;  %v1636_v58 = vadd.f32 0.4994258, %v623_v29 }
  0xef   :  { %v989_v40 = vclamps-f32 %v401_v4, 1.0  ;;  %v499_v38 = vmul.f32 %v498_v3, %v1604_v36  ;;  %v1639_v16 = vpop.eup %1043  ;;  %v1641_v17 = vadd.f32 0.014752088, %v659_v14  ;;  %v453_v19 = vadd.f32 0.18741608, %v452_v41 }
  0xf0   :  { %v469_v13 = vsub.f32 1.0, %v468_v57  ;;  %v1644_v39 = vadd.f32 %v1180_v26, %v127_v20  ;;  %v808_v63 = vadd.f32 1.0, %v988_v44  ;;  %v430_v32 = vmul.f32 %v1597_v61, %v429_v31 }
  0xf1   :  { %v500_v30 = vadd.f32 0.014752088, %v499_v38  ;;  %v1648_v46 = vmul.f32 0.70710677, %v1627_v50  ;;  %v415_v45 = vadd.f32 1.1283791, %v414_v37  ;;  %v1656_v29 = vadd.f32 %v1180_v26, %v129_v21 }
  0xf2   :  { %v698_v47 = vadd.f32 0.001143296, %v697_v6  ;;  %v470_v11 = vmul.f32 %v1624_v51, %v469_v13  ;;  %v486_v8 = vmul.f32 2.1237322e-06, %v1604_v36  ;;  %1009 = vmatmul.msk.bf16.gmra.mxu1 %vm864_vm4, %v837_v12  ;;  %v809_v54 = vadd.f32 1.0, %v989_v40 }
  0xf3   :  { %v438_v20 = vand.u32 2147483648, %v1541_v35  ;;  %v501_v53 = vmul.f32 %v500_v30, %v1604_v36  ;;  %v454_v4 = vmul.f32 %v453_v19, %v1493_v33  ;;  %vm473_vm10 = vweird.f32 %v1624_v51 }
  0xf4   :  { %v471_v28 = vadd.f32 %v1624_v51, %v470_v11  ;;  %v1662_v22 = vmul.f32 0.70710677, %v1644_v39  ;;  %v431_v14 = vadd.f32 %v1597_v61, %v430_v32  ;;  %vm433_vm11 = vweird.f32 %v1597_v61 }
  0xf5   :  { %v478_v41 = vand.u32 2147483648, %v1593_v34  ;;  %v524_v44 = vmul.f32 %v1648_v46, %v1648_v46  ;;  %vm472_vm12 = vweird.f32 %v1593_v34  ;;  %v476_v26 = vand.u32 2147483647, %v1593_v34 }
  0xf6   :  { %v487_v33 = vadd.f32 0.00028619796, %v486_v8  ;;  %v502_v31 = vadd.f32 0.112945676, %v501_v53  ;;  %vm432_vm13 = vweird.f32 %v1541_v35  ;;  %v436_v3 = vand.u32 2147483647, %v1541_v35  ;;  %vm1674_vm14 = vmor %vm472_vm12, %vm473_vm10 }
  0xf7   :  { %v699_v37 = vmul.f32 %v698_v47, %v1614_v18  ;;  %v1679_v57 = vmul.f32 0.70710677, %v1656_v29  ;;  %v439_v12 = vor.u32 1.1754944e-38, %v438_v20  ;;  %v455_v40 = vadd.f32 1.1283791, %v454_v4  ;;  %vm1687_vm15 = vmor %vm432_vm13, %vm433_vm11 }
  0xf8   :  { %v475_v34 = vsel %vm1674_vm14, %v1624_v51, %v471_v28  ;;  %v503_v38 = vmul.f32 %v502_v31, %v1604_v36  ;;  %v825_v19 = vmul.f32 %v809_v54, %v137_v49  ;;  %v479_v13 = vor.u32 1.1754944e-38, %v478_v41 }
  0xf9   :  { %v724_v21 = vmul.f32 %v1662_v22, %v1662_v22  ;;  %v1693_v32 = vmin.f32 %v524_v44, 16.0  ;;  %v435_v30 = vsel %vm1687_vm15, %v1597_v61, %v431_v14  ;;  %vm477_vm0 = vcmp.eq.f32.partialorder %v476_v26, 8.507059e+37 }
  0xfa   :  { %v488_v51 = vmul.f32 %v487_v33, %v1604_v36  ;;  %v504_v49 = vadd.f32 0.4994258, %v503_v38  ;;  %v480_v47 = vsel %vm477_vm0, %v479_v13, %v475_v34  ;;  %v764_v11 = vmul.f32 %v1679_v57, %v1679_v57 }
  0xfb   :  { %v526_v8 = vmul.f32 2.1237322e-06, %v1693_v32  ;;  %v537_v54 = vmul.f32 3.8918573e-05, %v1693_v32  ;;  %v824_v20 = vmul.f32 %v808_v63, %v1407_v42  ;;  %v416_v53 = vmul.f32 %v415_v45, %v1303_v24 }
  0xfc   :  { %vm437_vm1 = vcmp.eq.f32.partialorder %v436_v3, 8.507059e+37  ;;  %v456_v4 = vmul.f32 %v455_v40, %v1471_v56  ;;  %v1706_v28 = vmin.f32 %v724_v21, 16.0  ;;  %v505_v14 = vmul.f32 %v504_v49, %v1604_v36 }
  0xfd   :  { %v440_v61 = vsel %vm437_vm1, %v439_v12, %v435_v30  ;;  %v527_v41 = vadd.f32 0.00028619796, %v526_v8  ;;  %v489_v26 = vadd.f32 0.0036580483, %v488_v51  ;;  %v538_v33 = vadd.f32 0.001143296, %v537_v54 }
  0xfe   :  { %v481_v44 = vmul.f32 %v480_v47, %v456_v4  ;;  %v838_v31 = vpack.c.bf16 %v825_v19, %v824_v20  ;;  %v700_v6 = vadd.f32 0.014752088, %v699_v37  ;;  %v1709_v34 = vadd.f32 1.0, %v505_v14 }
  0xff   :  { %v1711_v38 = vmin.f32 %v764_v11, 16.0  ;;  %v528_v24 = vmul.f32 %v527_v41, %v1693_v32  ;;  %v574_v42 = vmul.f32 %v1607_v43, %v1263_v27  ;;  %v625_v56 = vmul.f32 %v1636_v58, %v1438_v0 }
 0x100   :  { %v441_v63 = vmul.f32 %v440_v61, %v416_v53  ;;  %v539_v45 = vmul.f32 %v538_v33, %v1693_v32  ;;  %v588_v3 = vmul.f32 %v1639_v16, %v1519_v23  ;;  %v596_v37 = vand.u32 2147483647, %v1519_v23 }
 0x101   :  { %v661_v12 = vmul.f32 %v1641_v17, %v1555_v55  ;;  %1045 = vrcp.f32 %v1709_v34  ;;  %v611_v40 = vadd.f32 0.05243302, %v1634_v48  ;;  %v991_v19 = vclamps-f32 %v481_v44, 1.0 }
 0x102   :  { %v737_v27 = vmul.f32 3.8918573e-05, %v1706_v28  ;;  %v490_v43 = vmul.f32 %v489_v26, %v1604_v36  ;;  %1010 = vmatmul.msk.bf16.gmra.mxu1 %vm864_vm4, %v838_v31  ;;  %v701_v58 = vmul.f32 %v700_v6, %v1614_v18  ;;  %v777_v35 = vmul.f32 3.8918573e-05, %v1711_v38 }
 0x103   :  { %v529_v13 = vadd.f32 0.0036580483, %v528_v24  ;;  %v540_v21 = vadd.f32 0.014752088, %v539_v45  ;;  %v575_v30 = vadd.f32 1.1283791, %v574_v42  ;;  %vm592_vm2 = vweird.f32 %v1519_v23 }
 0x104   :  { %v598_v17 = vand.u32 2147483648, %v1519_v23  ;;  %v1732_v51 = vadd.f32 1.0, %v625_v56  ;;  %v990_v49 = vclamps-f32 %v441_v63, 1.0  ;;  %v589_v48 = vsub.f32 1.0, %v588_v3 }
 0x105   :  { %v646_v47 = vmul.f32 2.1237322e-06, %v1555_v55  ;;  %v662_v11 = vadd.f32 0.112945676, %v661_v12  ;;  %v541_v8 = vmul.f32 %v540_v21, %v1693_v32  ;;  %v612_v54 = vmul.f32 %v611_v40, %v1438_v0 }
 0x106   :  { %v811_v20 = vadd.f32 1.0, %v991_v19  ;;  %v738_v53 = vadd.f32 0.001143296, %v737_v27  ;;  %v491_v4 = vadd.f32 0.05243302, %v490_v43  ;;  %v530_v44 = vmul.f32 %v529_v13, %v1693_v32 }
 0x107   :  { %v1738_v61 = vpop.eup %1045  ;;  %v702_v14 = vadd.f32 0.112945676, %v701_v58  ;;  %v778_v41 = vadd.f32 0.001143296, %v777_v35  ;;  %v542_v26 = vadd.f32 0.112945676, %v541_v8  ;;  %1047 = vrcp.f32 %v1732_v51 }
 0x108   :  { %v810_v33 = vadd.f32 1.0, %v990_v49  ;;  %v139_v31 = vmul.f32 0.5, %v1442_v60  ;;  %v508_v6 = vmul.f32 %v1738_v61, %v1709_v34  ;;  %v1746_v24 = vmul.f32 %v575_v30, %v1241_v7 }
 0x109   :  { %v663_v42 = vmul.f32 %v662_v11, %v1555_v55  ;;  %v138_v56 = vmul.f32 0.5, %v1291_v9  ;;  %v543_v63 = vmul.f32 %v542_v26, %v1693_v32  ;;  %v739_v3 = vmul.f32 %v738_v53, %v1706_v28 }
 0x10a   :  { %v827_v45 = vmul.f32 %v811_v20, %v139_v31  ;;  %v492_v12 = vmul.f32 %v491_v4, %v1604_v36  ;;  %v509_v40 = vsub.f32 1.0, %v508_v6  ;;  %v703_v60 = vmul.f32 %v702_v14, %v1614_v18 }
 0x10b   :  { %v779_v19 = vmul.f32 %v778_v41, %v1711_v38  ;;  %v531_v27 = vadd.f32 0.05243302, %v530_v44  ;;  %v544_v43 = vadd.f32 0.4994258, %v543_v63  ;;  %v590_v7 = vmul.f32 %v1639_v16, %v589_v48 }
 0x10c   :  { %v613_v58 = vadd.f32 0.18741608, %v612_v54  ;;  %v647_v35 = vadd.f32 0.00028619796, %v646_v47  ;;  %v826_v13 = vmul.f32 %v810_v33, %v138_v56  ;;  %vm593_vm3 = vweird.f32 %v1639_v16 }
 0x10d   :  { %v664_v9 = vadd.f32 0.4994258, %v663_v42  ;;  %v686_v21 = vmul.f32 2.1237322e-06, %v1614_v18  ;;  %v545_v30 = vmul.f32 %v544_v43, %v1693_v32  ;;  %v1759_v49 = vpop.eup %1047  ;;  %v740_v11 = vadd.f32 0.014752088, %v739_v3  ;;  %vm1776_vm5 = vmor %vm592_vm2, %vm593_vm3 }
 0x10e   :  { %v493_v8 = vadd.f32 0.18741608, %v492_v12  ;;  %v510_v20 = vmul.f32 %v1738_v61, %v509_v40  ;;  %v839_v53 = vpack.c.bf16 %v827_v45, %v826_v13  ;;  %v704_v4 = vadd.f32 0.4994258, %v703_v60 }
 0x10f   :  { %v780_v14 = vadd.f32 0.014752088, %v779_v19  ;;  %v532_v48 = vmul.f32 %v531_v27, %v1693_v32  ;;  %v1763_v47 = vadd.f32 1.0, %v545_v30  ;;  %v1766_v54 = vadd.f32 %v1639_v16, %v590_v7 }
 0x110   :  { %v1768_v41 = vor.u32 1.1754944e-38, %v598_v17  ;;  %v614_v44 = vmul.f32 %v613_v58, %v1438_v0  ;;  %v648_v26 = vmul.f32 %v647_v35, %v1555_v55  ;;  %v628_v31 = vmul.f32 %v1759_v49, %v1732_v51 }
 0x111   :  { %v665_v6 = vmul.f32 %v664_v9, %v1555_v55  ;;  %v687_v42 = vadd.f32 0.00028619796, %v686_v21  ;;  %1049 = vrcp.f32 %v1763_v47  ;;  %v741_v0 = vmul.f32 %v740_v11, %v1706_v28 }
 0x112   :  { %v494_v17 = vmul.f32 %v493_v8, %v1604_v36  ;;  %v511_v56 = vadd.f32 %v1738_v61, %v510_v20  ;;  %vm513_vm6 = vweird.f32 %v1738_v61  ;;  %1011 = vmatmul.msk.bf16.gmra.mxu1 %vm864_vm4, %v839_v53  ;;  %v705_v63 = vmul.f32 %v704_v4, %v1614_v18 }
 0x113   :  { %v518_v45 = vand.u32 2147483648, %v1709_v34  ;;  %v781_v3 = vmul.f32 %v780_v14, %v1711_v38  ;;  %v533_v12 = vadd.f32 0.18741608, %v532_v48  ;;  %v595_v40 = vsel %vm1776_vm5, %v1639_v16, %v1766_v54 }
 0x114   :  { %v1796_v60 = vadd.f32 1.1283791, %v614_v44  ;;  %vm512_vm7 = vweird.f32 %v1709_v34  ;;  %v516_v36 = vand.u32 2147483647, %v1709_v34  ;;  %v629_v19 = vsub.f32 1.0, %v628_v31 }
 0x115   :  { %vm632_vm8 = vweird.f32 %v1732_v51  ;;  %v649_v27 = vadd.f32 0.0036580483, %v648_v26  ;;  %v688_v43 = vmul.f32 %v687_v42, %v1614_v18  ;;  %vm1802_vm9 = vmor %vm512_vm7, %vm513_vm6  ;;  %v1806_v58 = vadd.f32 1.0, %v665_v6 }
 0x116   :  { %v742_v35 = vadd.f32 0.112945676, %v741_v0  ;;  %v495_v13 = vadd.f32 1.1283791, %v494_v17  ;;  %v515_v9 = vsel %vm1802_vm9, %v1738_v61, %v511_v56  ;;  %v1811_v34 = vadd.f32 1.0, %v705_v63 }
 0x117   :  { %v1050_v21 = vpop.eup %1049  ;;  %v519_v30 = vor.u32 1.1754944e-38, %v518_v45  ;;  %v782_v11 = vadd.f32 0.112945676, %v781_v3  ;;  %v534_v8 = vmul.f32 %v533_v12, %v1693_v32  ;;  %vm1816_vm10 = vcmp.eq.f32.partialorder %v596_v37, 8.507059e+37 }
 0x118   :  { %vm633_vm11 = vweird.f32 %v1759_v49  ;;  %v636_v53 = vand.u32 2147483647, %v1732_v51  ;;  %vm517_vm12 = vcmp.eq.f32.partialorder %v516_v36, 8.507059e+37  ;;  %v548_v61 = vmul.f32 %v1050_v21, %v1763_v47 }
 0x119   :  { %v630_v4 = vmul.f32 %v1759_v49, %v629_v19  ;;  %v650_v14 = vmul.f32 %v649_v27, %v1555_v55  ;;  %v689_v48 = vadd.f32 0.0036580483, %v688_v43  ;;  %v520_v44 = vsel %vm517_vm12, %v519_v30, %v515_v9  ;;  %vm1840_vm14 = vmor %vm632_vm8, %vm633_vm11 }
 0x11a   :  { %1051 = vrcp.f32 %v1806_v58  ;;  %v743_v23 = vmul.f32 %v742_v35, %v1706_v28  ;;  %v496_v32 = vmul.f32 %v495_v13, %v1573_v5  ;;  %v549_v37 = vsub.f32 1.0, %v548_v61 }
 0x11b   :  { %1053 = vrcp.f32 %v1811_v34  ;;  %v783_v26 = vmul.f32 %v782_v11, %v1711_v38  ;;  %v535_v31 = vadd.f32 1.1283791, %v534_v8  ;;  %v558_v6 = vand.u32 2147483648, %v1763_v47 }
 0x11c   :  { %v521_v42 = vmul.f32 %v520_v44, %v496_v32  ;;  %v550_v0 = vmul.f32 %v1050_v21, %v549_v37  ;;  %vm553_vm13 = vweird.f32 %v1050_v21  ;;  %v556_v17 = vand.u32 2147483647, %v1763_v47 }
 0x11d   :  { %v631_v56 = vadd.f32 %v1759_v49, %v630_v4  ;;  %v638_v63 = vand.u32 2147483648, %v1732_v51  ;;  %v690_v45 = vmul.f32 %v689_v48, %v1614_v18  ;;  %v726_v5 = vmul.f32 2.1237322e-06, %v1706_v28 }
 0x11e   :  { %v744_v12 = vadd.f32 0.4994258, %v743_v23  ;;  %v766_v36 = vmul.f32 2.1237322e-06, %v1711_v38  ;;  %v551_v19 = vadd.f32 %v1050_v21, %v550_v0  ;;  %vm552_vm15 = vweird.f32 %v1763_v47 }
 0x11f   :  { %vm1846_vm0 = vcmp.eq.f32.partialorder %v636_v53, 8.507059e+37  ;;  %v651_v43 = vadd.f32 0.05243302, %v650_v14  ;;  %v784_v7 = vadd.f32 0.4994258, %v783_v26  ;;  %vm554_vm1 = vmor %vm552_vm15, %vm553_vm13  ;;  %v559_v35 = vor.u32 1.1754944e-38, %v558_v6 }
 0x120   :  { %v1850_v13 = vpop.eup %1051  ;;  %v992_v51 = vclamps-f32 %v521_v42, 1.0  ;;  %v536_v9 = vmul.f32 %v535_v31, %v1648_v46  ;;  %v555_v30 = vsel %vm554_vm1, %v1050_v21, %v551_v19  ;;  %vm557_vm2 = vcmp.eq.f32.partialorder %v556_v17, 8.507059e+37 }
 0x121   :  { %v1853_v11 = vpop.eup %1053  ;;  %v639_v8 = vor.u32 1.1754944e-38, %v638_v63  ;;  %v691_v61 = vadd.f32 0.05243302, %v690_v45  ;;  %v727_v47 = vadd.f32 0.00028619796, %v726_v5  ;;  %v560_v53 = vsel %vm557_vm2, %v559_v35, %v555_v30 }
 0x122   :  { %v635_v4 = vsel %vm1840_vm14, %v1759_v49, %v631_v56  ;;  %v745_v14 = vmul.f32 %v744_v12, %v1706_v28  ;;  %v767_v48 = vadd.f32 0.00028619796, %v766_v36  ;;  %v561_v44 = vmul.f32 %v560_v53, %v536_v9 }
 0x123   :  { %v600_v46 = vsel %vm1816_vm10, %v1768_v41, %v595_v40  ;;  %v652_v21 = vmul.f32 %v651_v43, %v1555_v55  ;;  %v668_v23 = vmul.f32 %v1850_v13, %v1806_v58  ;;  %v785_v49 = vmul.f32 %v784_v7, %v1711_v38 }
 0x124   :  { %v616_v32 = vmul.f32 %v1796_v60, %v1399_v10  ;;  %v708_v33 = vmul.f32 %v1853_v11, %v1811_v34  ;;  %v812_v37 = vadd.f32 1.0, %v992_v51  ;;  %v993_v26 = vclamps-f32 %v561_v44, 1.0 }
 0x125   :  { %v640_v16 = vsel %vm1846_vm0, %v639_v8, %v635_v4  ;;  %v692_v54 = vmul.f32 %v691_v61, %v1614_v18  ;;  %v728_v41 = vmul.f32 %v727_v47, %v1706_v28  ;;  %v140_v40 = vmul.f32 0.5, %v1550_v25 }
 0x126   :  { %v1880_v20 = vadd.f32 1.0, %v745_v14  ;;  %v768_v31 = vmul.f32 %v767_v48, %v1711_v38  ;;  %v141_v10 = vmul.f32 0.5, %v1627_v50  ;;  %v813_v60 = vadd.f32 1.0, %v993_v26 }
 0x127   :  { %v601_v6 = vmul.f32 %v600_v46, %v1746_v24  ;;  %v653_v42 = vadd.f32 0.18741608, %v652_v21  ;;  %v669_v0 = vsub.f32 1.0, %v668_v23  ;;  %v1885_v17 = vadd.f32 1.0, %v785_v49 }
 0x128   :  { %v641_v56 = vmul.f32 %v640_v16, %v616_v32  ;;  %v709_v63 = vsub.f32 1.0, %v708_v33  ;;  %v828_v45 = vmul.f32 %v812_v37, %v140_v40  ;;  %v829_v5 = vmul.f32 %v813_v60, %v141_v10 }
 0x129   :  { %v729_v3 = vadd.f32 0.0036580483, %v728_v41  ;;  %v693_v12 = vadd.f32 0.18741608, %v692_v54  ;;  %1055 = vrcp.f32 %v1880_v20  ;;  %v769_v25 = vadd.f32 0.0036580483, %v768_v31 }
 0x12a   :  { %v840_v36 = vpack.c.bf16 %v829_v5, %v828_v45  ;;  %v670_v19 = vmul.f32 %v1850_v13, %v669_v0  ;;  %1057 = vrcp.f32 %v1885_v17  ;;  %v994_v50 = vclamps-f32 %v601_v6, 1.0 }
 0x12b   :  { %v995_v24 = vclamps-f32 %v641_v56, 1.0  ;;  %v654_v27 = vmul.f32 %v653_v42, %v1555_v55  ;;  %v710_v43 = vmul.f32 %v1853_v11, %v709_v63  ;;  %vm672_vm3 = vweird.f32 %v1806_v58 }
 0x12c   :  { %1012 = vmatmul.msk.bf16.vlgmr.msra.gmra.mxu2 %vm864_vm4, %v840_v36  ;;  %vm673_vm5 = vweird.f32 %v1850_v13  ;;  %v678_v7 = vand.u32 2147483648, %v1806_v58  ;;  %v730_v35 = vmul.f32 %v729_v3, %v1706_v28  ;;  %v694_v51 = vmul.f32 %v693_v12, %v1614_v18 }
 0x12d   :  { %vm712_vm6 = vweird.f32 %v1811_v34  ;;  %vm713_vm7 = vweird.f32 %v1853_v11  ;;  %v770_v55 = vmul.f32 %v769_v25, %v1711_v38  ;;  %v671_v9 = vadd.f32 %v1850_v13, %v670_v19  ;;  %vm1907_vm8 = vmor %vm672_vm3, %vm673_vm5 }
 0x12e   :  { %v676_v30 = vand.u32 2147483647, %v1806_v58  ;;  %v718_v8 = vand.u32 2147483648, %v1811_v34  ;;  %v142_v47 = vmul.f32 0.5, %v1231_v62  ;;  %v711_v18 = vadd.f32 %v1853_v11, %v710_v43  ;;  %vm1918_vm9 = vmor %vm712_vm6, %vm713_vm7 }
 0x12f   :  { %v1904_v61 = vpop.eup %1055  ;;  %v716_v4 = vand.u32 2147483647, %v1811_v34  ;;  %v814_v48 = vadd.f32 1.0, %v994_v50  ;;  %v143_v44 = vmul.f32 0.5, %v1351_v15  ;;  %v655_v58 = vadd.f32 1.1283791, %v654_v27 }
 0x130   :  { %v1913_v14 = vpop.eup %1057  ;;  %v731_v62 = vadd.f32 0.05243302, %v730_v35  ;;  %v815_v21 = vadd.f32 1.0, %v995_v24  ;;  %v679_v23 = vor.u32 1.1754944e-38, %v678_v7  ;;  %v695_v49 = vadd.f32 1.1283791, %v694_v51 }
 0x131   :  { %v771_v32 = vadd.f32 0.05243302, %v770_v55  ;;  %v675_v33 = vsel %vm1907_vm8, %v1850_v13, %v671_v9  ;;  %vm677_vm10 = vcmp.eq.f32.partialorder %v676_v30, 8.507059e+37  ;;  %v719_v37 = vor.u32 1.1754944e-38, %v718_v8 }
 0x132   :  { %v715_v15 = vsel %vm1918_vm9, %v1853_v11, %v711_v18  ;;  %vm717_vm11 = vcmp.eq.f32.partialorder %v716_v4, 8.507059e+37  ;;  %v748_v34 = vmul.f32 %v1904_v61, %v1880_v20  ;;  %v788_v26 = vmul.f32 %v1913_v14, %v1885_v17 }
 0x133   :  { %v830_v16 = vmul.f32 %v814_v48, %v142_v47  ;;  %v656_v54 = vmul.f32 %v655_v58, %v1522_v59  ;;  %v732_v41 = vmul.f32 %v731_v62, %v1706_v28  ;;  %v831_v40 = vmul.f32 %v815_v21, %v143_v44 }
 0x134   :  { %v680_v13 = vsel %vm677_vm10, %v679_v23, %v675_v33  ;;  %v696_v31 = vmul.f32 %v695_v49, %v1561_v2  ;;  %v772_v10 = vmul.f32 %v771_v32, %v1711_v38  ;;  %v720_v60 = vsel %vm717_vm11, %v719_v37, %v715_v15 }
 0x135   :  { %v749_v11 = vsub.f32 1.0, %v748_v34  ;;  %v789_v6 = vsub.f32 1.0, %v788_v26  ;;  %v681_v42 = vmul.f32 %v680_v13, %v656_v54  ;;  %v733_v0 = vadd.f32 0.18741608, %v732_v41 }
 0x136   :  { %v721_v56 = vmul.f32 %v720_v60, %v696_v31  ;;  %v773_v63 = vadd.f32 0.18741608, %v772_v10  ;;  %v841_v45 = vpack.c.bf16 %v831_v40, %v830_v16  ;;  %vm752_vm12 = vweird.f32 %v1880_v20 }
 0x137   :  { %v750_v5 = vmul.f32 %v1904_v61, %v749_v11  ;;  %v790_v59 = vmul.f32 %v1913_v14, %v789_v6  ;;  %v996_v3 = vclamps-f32 %v681_v42, 1.0  ;;  %v734_v12 = vmul.f32 %v733_v0, %v1706_v28 }
 0x138   :  { %vm753_vm13 = vweird.f32 %v1904_v61  ;;  %v997_v2 = vclamps-f32 %v721_v56, 1.0  ;;  %v774_v25 = vmul.f32 %v773_v63, %v1711_v38  ;;  %vm792_vm14 = vweird.f32 %v1885_v17 }
 0x139   :  { %vm793_vm15 = vweird.f32 %v1913_v14  ;;  %v758_v36 = vand.u32 2147483648, %v1880_v20  ;;  %v798_v19 = vand.u32 2147483648, %v1885_v17  ;;  %v751_v50 = vadd.f32 %v1904_v61, %v750_v5  ;;  %vm1948_vm0 = vmor %vm752_vm12, %vm753_vm13 }
 0x13a   :  { %v756_v28 = vand.u32 2147483647, %v1880_v20  ;;  %v791_v27 = vadd.f32 %v1913_v14, %v790_v59  ;;  %v796_v38 = vand.u32 2147483647, %v1885_v17  ;;  %v144_v43 = vmul.f32 0.5, %v1507_v1  ;;  %vm1957_vm1 = vmor %vm792_vm14, %vm793_vm15 }
 0x13b   :  { %v145_v7 = vmul.f32 0.5, %v1539_v52  ;;  %v816_v51 = vadd.f32 1.0, %v996_v3  ;;  %v817_v55 = vadd.f32 1.0, %v997_v2  ;;  %v735_v9 = vadd.f32 1.1283791, %v734_v12 }
 0x13c   :  { %1013 = vmatmul.msk.bf16.gmra.mxu2 %vm864_vm4, %v841_v45  ;;  %v775_v30 = vadd.f32 1.1283791, %v774_v25  ;;  %v759_v8 = vor.u32 1.1754944e-38, %v758_v36  ;;  %v799_v47 = vor.u32 1.1754944e-38, %v798_v19  ;;  %v755_v20 = vsel %vm1948_vm0, %v1904_v61, %v751_v50 }
 0x13d   :  { %vm757_vm2 = vcmp.eq.f32.partialorder %v756_v28, 8.507059e+37  ;;  %v795_v1 = vsel %vm1957_vm1, %v1913_v14, %v791_v27  ;;  %vm797_vm3 = vcmp.eq.f32.partialorder %v796_v38, 8.507059e+37  ;;  %v832_v52 = vmul.f32 %v816_v51, %v144_v43 }
 0x13e   :  { %v833_v17 = vmul.f32 %v817_v55, %v145_v7  ;;  %v736_v53 = vmul.f32 %v735_v9, %v1662_v22  ;;  %v776_v18 = vmul.f32 %v775_v30, %v1679_v57  ;;  %v760_v4 = vsel %vm757_vm2, %v759_v8, %v755_v20  ;;  %v1026_v57 = vld [vmem:[%s1983_s4] ss:$0 sm:$0xff]  ;;  %s1085_s4 = smov [#allocation2]  }
 0x13f   :  { %v800_v48 = vsel %vm797_vm3, %v799_v47, %v795_v1  ;;  %v146_v21 = vmul.f32 0.5, %v1644_v39  ;;  %v147_v14 = vmul.f32 0.5, %v1656_v29  ;;  %s958_s30 = sshll.u32 %s1085_s4, 4  ;;  %s959_s30 = int_to_ptr.vmem [resolvable:$true] %s958_s30 }
 0x140   :  { %v761_v44 = vmul.f32 %v760_v4, %v736_v53  ;;  %v801_v58 = vmul.f32 %v800_v48, %v776_v18  ;;  %v842_v46 = vpack.c.bf16 %v833_v17, %v832_v52 }
 0x142   :  { %v998_v61 = vclamps-f32 %v761_v44, 1.0  ;;  %v999_v62 = vclamps-f32 %v801_v58, 1.0 }
 0x144   :  { %v818_v23 = vadd.f32 1.0, %v998_v61  ;;  %v819_v49 = vadd.f32 1.0, %v999_v62 }
 0x146   :  { %v834_v32 = vmul.f32 %v818_v23, %v146_v21  ;;  %v835_v33 = vmul.f32 %v819_v49, %v147_v14 }
 0x148   :  { %v843_v22 = vpack.c.bf16 %v835_v33, %v834_v32 }
 0x14c   :  { %1014 = vmatmul.msk.bf16.gmra.mxu2 %vm864_vm4, %v842_v46 }
 0x15c   :  { %1015 = vmatmul.msk.bf16.gmra.mxu2 %vm864_vm4, %v843_v22 }
 0x15f   :  { %v898_v37 = vpop.f32.mrf.mxu1 }
 0x160   :  { %v899_v15 = vadd.f32 %v1026_v57, %v898_v37 }
 0x162   :  { %938 = vst [vmem:[#allocation2] sm:$0xff] %v899_v15 }
 0x167   :  { %v900_v34 = vpop.f32.mrf.mxu1 }
 0x168   :  { %v901_v26 = vadd.f32 %v1026_v57, %v900_v34 }
 0x16a   :  { %939 = vst [vmem:[#allocation2 + $0x8] sm:$0xff] %v901_v26 }
 0x16f   :  { %v903_v39 = vpop.f32.mrf.mxu1 }
 0x170   :  { %v904_v16 = vadd.f32 %v1026_v57, %v903_v39 }
 0x172   :  { %940 = vst [vmem:[#allocation2 + $0x10] sm:$0xff] %v904_v16 }
 0x177   :  { %v905_v29 = vpop.f32.mrf.mxu1 }
 0x178   :  { %v906_v54 = vadd.f32 %v1026_v57, %v905_v29 }
 0x17a   :  { %941 = vst [vmem:[#allocation2 + $0x18] sm:$0xff] %v906_v54 }
 0x17f   :  { %v908_v41 = vpop.f32.mrf.mxu1 }
 0x180   :  { %v909_v40 = vadd.f32 %v1026_v57, %v908_v41 }
 0x182   :  { %942 = vst [vmem:[#allocation2 + $0x20] sm:$0xff] %v909_v40 }
 0x187   :  { %v910_v13 = vpop.f32.mrf.mxu1 }
 0x188   :  { %v911_v31 = vadd.f32 %v1026_v57, %v910_v13 }
 0x18a   :  { %943 = vst [vmem:[#allocation2 + $0x28] sm:$0xff] %v911_v31 }
 0x18f   :  { %v913_v10 = vpop.f32.mrf.mxu1 }
 0x190   :  { %v914_v60 = vadd.f32 %v1026_v57, %v913_v10 }
 0x192   :  { %944 = vst [vmem:[#allocation2 + $0x30] sm:$0xff] %v914_v60 }
 0x197   :  { %v915_v11 = vpop.f32.mrf.mxu1 }
 0x198   :  { %v916_v6 = vadd.f32 %v1026_v57, %v915_v11 }
 0x19a   :  { %945 = vst [vmem:[#allocation2 + $0x38] sm:$0xff] %v916_v6 }
 0x1af   :  { %v918_v42 = vpop.f32.mrf.mxu2 }
 0x1b0   :  { %v919_v0 = vadd.f32 %v1026_v57, %v918_v42 }
 0x1b2   :  { %946 = vst [vmem:[#allocation2 + $0x40] sm:$0xff] %v919_v0 }
 0x1b7   :  { %v920_v56 = vpop.f32.mrf.mxu2 }
 0x1b8   :  { %v921_v63 = vadd.f32 %v1026_v57, %v920_v56 }
 0x1ba   :  { %947 = vst [vmem:[#allocation2 + $0x48] sm:$0xff] %v921_v63 }
 0x1bf   :  { %v923_v45 = vpop.f32.mrf.mxu2 }
 0x1c0   :  { %v924_v5 = vadd.f32 %v1026_v57, %v923_v45 }
 0x1c2   :  { %948 = vst [vmem:[#allocation2 + $0x50] sm:$0xff] %v924_v5 }
 0x1c7   :  { %v925_v59 = vpop.f32.mrf.mxu2 }
 0x1c8   :  { %v926_v3 = vadd.f32 %v1026_v57, %v925_v59 }
 0x1ca   :  { %949 = vst [vmem:[#allocation2 + $0x58] sm:$0xff] %v926_v3 }
 0x1cf   :  { %v928_v12 = vpop.f32.mrf.mxu2 }
 0x1d0   :  { %v929_v2 = vadd.f32 %v1026_v57, %v928_v12 }
 0x1d2   :  { %950 = vst [vmem:[#allocation2 + $0x60] sm:$0xff] %v929_v2 }
 0x1d7   :  { %v930_v25 = vpop.f32.mrf.mxu2 }
 0x1d8   :  { %v931_v36 = vadd.f32 %v1026_v57, %v930_v25 }
 0x1da   :  { %951 = vst [vmem:[#allocation2 + $0x68] sm:$0xff] %v931_v36 }
 0x1df   :  { %v933_v19 = vpop.f32.mrf.mxu2 }
 0x1e0   :  { %v934_v50 = vadd.f32 %v1026_v57, %v933_v19 }
 0x1e2   :  { %952 = vst [vmem:[#allocation2 + $0x70] sm:$0xff] %v934_v50 }
 0x1e7   :  { %v935_v24 = vpop.f32.mrf.mxu2 }
 0x1e8   :  { %v936_v28 = vadd.f32 %v1026_v57, %v935_v24 }
 0x1ea   :  { %953 = vst [vmem:[#allocation2 + $0x78] sm:$0xff] %v936_v28 }
 0x1eb   :  { %966 = dma.vmem_to_hbm [thread:$0]  %s959_s30, 2048, %s961_s8, [#allocation3], %s1086_s9, %s1086_s9, %s1087_s10  }
 0x1ec   :  { %1083 = dma.done.wait [#allocation3], 2048  }
 0x1ed   :  { %1084 = vsyncadd [#allocation3], 4294965248 }
 0x1ee   :  { %971 = vsyncpa [#allocation3], 1 }

// kernel: tpu_custom_call.1
= control target key start
LH: loop header
LB: loop body
LE: loop exit
PB: predicated region body
PF: predicated region fallthrough
CT: control target
= control target key end

     0   :  { %vm58_vm0 = vcmask 130048   ;;  %s1979_s0 = inlined_call_operand.vmem [shape: f32[128,16], index: 0, kind: input, shape index: {}]   ;;  %s1980_s1 = inlined_call_operand.vmem [shape: bf16[16,32], index: 1, kind: input, shape index: {}]   ;;  %s1981_s2 = inlined_call_operand.vmem [shape: f32[1,32], index: 2, kind: input, shape index: {}]   ;;  %s1982_s3 = inlined_call_operand.vmem [shape: bf16[32,128], index: 3, kind: input, shape index: {}]   ;;  %s1983_s4 = inlined_call_operand.vmem [shape: f32[1,128], index: 4, kind: input, shape index: {}]   ;;  %s1984_s5 = inlined_call_operand.hbm [shape: f32[128,128], index: 5, kind: output, shape index: {}]  }
   0x1   :  { %v1016_v0 = vld [vmem:[%s1980_s1] sm:$0xff]  ;;  %v23_v2 = vld [vmem:[%s1979_s0 + $0x8] sm:$0xff]  ;;  %v32_v4 = vld [vmem:[%s1979_s0 + $0x50] sm:$0xff] }
   0x2   :  { %v22_v1 = vld [vmem:[%s1979_s0] sm:$0xff]  ;;  %90 = vmatpush.bf16.msra.mxu0 %v1016_v0  ;;  %1019 = vmatpush.bf16.msra.mxu3 %v1016_v0  ;;  %v33_v5 = vld [vmem:[%s1979_s0 + $0x58] sm:$0xff] }
   0x3   :  { %v38_v3 = vpack.c.bf16 %v23_v2, %v22_v1  ;;  %v43_v6 = vpack.c.bf16 %v33_v5, %v32_v4 }
   0x4   :  { %10 = vsyncpa [#allocation3], 0  ;;  %v24_v7 = vld [vmem:[%s1979_s0 + $0x10] sm:$0xff]  ;;  %v25_v8 = vld [vmem:[%s1979_s0 + $0x18] sm:$0xff]  ;;  %s960_s8 = sshll.u32 %s1984_s5, 4  ;;  %s1086_s9 = smov 128   ;;  %s961_s8 = int_to_ptr.hbm [resolvable:$true] %s960_s8 }
   0x5   :  { %976 = vmatmul.msk.bf16.vlgmr.msra.gmra.mxu0 %vm58_vm0, %v38_v3  ;;  %981 = vmatmul.msk.bf16.vlgmr.msra.gmra.mxu3 %vm58_vm0, %v43_v6  ;;  %v34_v9 = vld [vmem:[%s1979_s0 + $0x60] sm:$0xff]  ;;  %v35_v10 = vld [vmem:[%s1979_s0 + $0x68] sm:$0xff]  ;;  %v39_v11 = vpack.c.bf16 %v25_v8, %v24_v7  ;;  %v36_v15 = vld [vmem:[%s1979_s0 + $0x70] sm:$0xff]  ;;  %s1087_s10 = smov 8  }
   0x6   :  { %v44_v12 = vpack.c.bf16 %v35_v10, %v34_v9  ;;  %v26_v13 = vld [vmem:[%s1979_s0 + $0x20] sm:$0xff]  ;;  %v27_v14 = vld [vmem:[%s1979_s0 + $0x28] sm:$0xff]  ;;  %v37_v16 = vld [vmem:[%s1979_s0 + $0x78] sm:$0xff] }
   0x7   :  { %v40_v17 = vpack.c.bf16 %v27_v14, %v26_v13  ;;  %v45_v18 = vpack.c.bf16 %v37_v16, %v36_v15  ;;  %v28_v19 = vld [vmem:[%s1979_s0 + $0x30] sm:$0xff]  ;;  %v29_v20 = vld [vmem:[%s1979_s0 + $0x38] sm:$0xff]  ;;  %v30_v22 = vld [vmem:[%s1979_s0 + $0x40] sm:$0xff] }
   0x8   :  { %v41_v21 = vpack.c.bf16 %v29_v20, %v28_v19  ;;  %v31_v23 = vld [vmem:[%s1979_s0 + $0x48] sm:$0xff]  ;;  %v1180_v26 = vld [vmem:[%s1981_s2] ss:$0 sm:$0xff] }
   0x9   :  { %v42_v24 = vpack.c.bf16 %v31_v23, %v30_v22 }
  0x15   :  { %977 = vmatmul.msk.bf16.gmra.mxu0 %vm58_vm0, %v39_v11  ;;  %982 = vmatmul.msk.bf16.gmra.mxu3 %vm58_vm0, %v44_v12 }
  0x25   :  { %978 = vmatmul.msk.bf16.gmra.mxu0 %vm58_vm0, %v40_v17  ;;  %983 = vmatmul.msk.bf16.gmra.mxu3 %vm58_vm0, %v45_v18 }
  0x35   :  { %979 = vmatmul.msk.bf16.gmra.mxu0 %vm58_vm0, %v41_v21 }
  0x45   :  { %980 = vmatmul.msk.bf16.gmra.mxu0 %vm58_vm0, %v42_v24 }
  0x82   :  { %v92_v25 = vpop.f32.mrf.mxu0 }
  0x83   :  { %v1183_v28 = vadd.f32 %v1180_v26, %v92_v25 }
  0x85   :  { %v1186_v29 = vmul.f32 0.70710677, %v1183_v28 }
  0x87   :  { %v164_v30 = vmul.f32 %v1186_v29, %v1186_v29 }
  0x88   :  { %v117_v61 = vpop.f32.mrf.mxu3 }
  0x89   :  { %v1193_v33 = vmin.f32 %v164_v30, 16.0  ;;  %v1231_v62 = vadd.f32 %v1180_v26, %v117_v61 }
  0x8a   :  { %v94_v27 = vpop.f32.mrf.mxu0 }
  0x8b   :  { %v1191_v31 = vadd.f32 %v1180_v26, %v94_v27  ;;  %v177_v35 = vmul.f32 3.8918573e-05, %v1193_v33  ;;  %v166_v59 = vmul.f32 2.1237322e-06, %v1193_v33  ;;  %v1241_v7 = vmul.f32 0.70710677, %v1231_v62 }
  0x8d   :  { %v1196_v34 = vmul.f32 0.70710677, %v1191_v31  ;;  %v178_v39 = vadd.f32 0.001143296, %v177_v35  ;;  %v167_v3 = vadd.f32 0.00028619796, %v166_v59  ;;  %v564_v16 = vmul.f32 %v1241_v7, %v1241_v7 }
  0x8f   :  { %v204_v36 = vmul.f32 %v1196_v34, %v1196_v34  ;;  %v179_v43 = vmul.f32 %v178_v39, %v1193_v33  ;;  %v168_v13 = vmul.f32 %v167_v3, %v1193_v33  ;;  %v1263_v27 = vmin.f32 %v564_v16, 16.0 }
  0x91   :  { %v1204_v40 = vmin.f32 %v204_v36, 16.0  ;;  %v180_v47 = vadd.f32 0.014752088, %v179_v43  ;;  %v169_v23 = vadd.f32 0.0036580483, %v168_v13 }
  0x92   :  { %v97_v32 = vpop.f32.mrf.mxu0 }
  0x93   :  { %v1202_v37 = vadd.f32 %v1180_v26, %v97_v32  ;;  %v217_v44 = vmul.f32 3.8918573e-05, %v1204_v40  ;;  %v181_v51 = vmul.f32 %v180_v47, %v1193_v33  ;;  %v206_v4 = vmul.f32 2.1237322e-06, %v1204_v40 }
  0x94   :  { %v170_v43 = vmul.f32 %v169_v23, %v1193_v33  ;;  %v577_v47 = vmul.f32 3.8918573e-05, %v1263_v27 }
  0x95   :  { %v1207_v41 = vmul.f32 0.70710677, %v1202_v37  ;;  %v218_v48 = vadd.f32 0.001143296, %v217_v44  ;;  %v182_v56 = vadd.f32 0.112945676, %v181_v51 }
  0x96   :  { %v207_v14 = vadd.f32 0.00028619796, %v206_v4 }
  0x97   :  { %v244_v45 = vmul.f32 %v1207_v41, %v1207_v41  ;;  %v219_v52 = vmul.f32 %v218_v48, %v1204_v40  ;;  %v183_v63 = vmul.f32 %v182_v56, %v1193_v33 }
  0x98   :  { %v208_v24 = vmul.f32 %v207_v14, %v1204_v40 }
  0x99   :  { %v1219_v49 = vmin.f32 %v244_v45, 16.0  ;;  %v220_v57 = vadd.f32 0.014752088, %v219_v52  ;;  %v184_v8 = vadd.f32 0.4994258, %v183_v63 }
  0x9a   :  { %v99_v38 = vpop.f32.mrf.mxu0  ;;  %v209_v44 = vadd.f32 0.0036580483, %v208_v24 }
  0x9b   :  { %v1210_v42 = vadd.f32 %v1180_v26, %v99_v38  ;;  %v257_v54 = vmul.f32 3.8918573e-05, %v1219_v49  ;;  %v221_v0 = vmul.f32 %v220_v57, %v1204_v40  ;;  %v185_v17 = vmul.f32 %v184_v8, %v1193_v33 }
  0x9c   :  { %v246_v19 = vmul.f32 2.1237322e-06, %v1219_v49  ;;  %v210_v56 = vmul.f32 %v209_v44, %v1204_v40  ;;  %v1018_v44 = vld [vmem:[%s1982_s3 + $0x8] sm:$0xff] }
  0x9d   :  { %v1217_v46 = vmul.f32 0.70710677, %v1210_v42  ;;  %v258_v58 = vadd.f32 0.001143296, %v257_v54  ;;  %v222_v9 = vadd.f32 0.112945676, %v221_v0  ;;  %895 = vmatpush.bf16.msra.mxu1 %v1018_v44  ;;  %1020 = vmatpush.bf16.msra.mxu2 %v1018_v44 }
  0x9e   :  { %v1265_v30 = vadd.f32 1.0, %v185_v17  ;;  %v247_v35 = vadd.f32 0.00028619796, %v246_v19  ;;  %v171_v54 = vadd.f32 0.05243302, %v170_v43 }
  0x9f   :  { %v284_v50 = vmul.f32 %v1217_v46, %v1217_v46  ;;  %v259_v1 = vmul.f32 %v258_v58, %v1219_v49  ;;  %v223_v18 = vmul.f32 %v222_v9, %v1204_v40  ;;  %v578_v58 = vadd.f32 0.001143296, %v577_v47 }
  0xa0   :  { %1027 = vrcp.f32 %v1265_v30  ;;  %v172_v4 = vmul.f32 %v171_v54, %v1193_v33  ;;  %vm192_vm2 = vweird.f32 %v1265_v30 }
  0xa1   :  { %v1226_v55 = vmin.f32 %v284_v50, 16.0  ;;  %v260_v10 = vadd.f32 0.014752088, %v259_v1  ;;  %v224_v32 = vadd.f32 0.4994258, %v223_v18  ;;  %v248_v50 = vmul.f32 %v247_v35, %v1219_v49 }
  0xa2   :  { %v102_v53 = vpop.f32.mrf.mxu0  ;;  %v579_v8 = vmul.f32 %v578_v58, %v1263_v27  ;;  %v173_v18 = vadd.f32 0.18741608, %v172_v4  ;;  %v566_v35 = vmul.f32 2.1237322e-06, %v1263_v27 }
  0xa3   :  { %v297_v60 = vmul.f32 3.8918573e-05, %v1226_v55  ;;  %v1237_v2 = vadd.f32 %v1180_v26, %v102_v53  ;;  %v261_v20 = vmul.f32 %v260_v10, %v1219_v49  ;;  %v225_v48 = vmul.f32 %v224_v32, %v1204_v40 }
  0xa4   :  { %v286_v13 = vmul.f32 2.1237322e-06, %v1226_v55  ;;  %v567_v58 = vadd.f32 0.00028619796, %v566_v35 }
  0xa5   :  { %v298_v5 = vadd.f32 0.001143296, %v297_v60  ;;  %v1244_v11 = vmul.f32 0.70710677, %v1237_v2  ;;  %v262_v36 = vadd.f32 0.112945676, %v261_v20 }
  0xa6   :  { %v1282_v59 = vadd.f32 1.0, %v225_v48  ;;  %v249_v60 = vadd.f32 0.0036580483, %v248_v50  ;;  %v1285_v3 = vpop.eup %1027  ;;  %v287_v32 = vadd.f32 0.00028619796, %v286_v13 }
  0xa7   :  { %v299_v15 = vmul.f32 %v298_v5, %v1226_v55  ;;  %v324_v21 = vmul.f32 %v1244_v11, %v1244_v11  ;;  %v263_v51 = vmul.f32 %v262_v36, %v1219_v49  ;;  %v211_v5 = vadd.f32 0.05243302, %v210_v56 }
  0xa8   :  { %v250_v10 = vmul.f32 %v249_v60, %v1219_v49  ;;  %1029 = vrcp.f32 %v1282_v59  ;;  %vm193_vm1 = vweird.f32 %v1285_v3  ;;  %vm232_vm5 = vweird.f32 %v1282_v59 }
  0xa9   :  { %v300_v25 = vadd.f32 0.014752088, %v299_v15  ;;  %v1267_v38 = vmin.f32 %v324_v21, 16.0  ;;  %v264_v63 = vadd.f32 0.4994258, %v263_v51  ;;  %v188_v15 = vmul.f32 %v1285_v3, %v1265_v30  ;;  %vm1366_vm4 = vmor %vm192_vm2, %vm193_vm1 }
  0xaa   :  { %v104_v6 = vpop.f32.mrf.mxu0  ;;  %v212_v19 = vmul.f32 %v211_v5, %v1204_v40  ;;  %v580_v21 = vadd.f32 0.014752088, %v579_v8  ;;  %v1316_v51 = vmul.f32 0.5, %v1183_v28  ;;  %v198_v8 = vand.u32 2147483648, %v1265_v30 }
  0xab   :  { %v1247_v12 = vadd.f32 %v1180_v26, %v104_v6  ;;  %v301_v45 = vmul.f32 %v300_v25, %v1226_v55  ;;  %v337_v52 = vmul.f32 3.8918573e-05, %v1267_v38  ;;  %v265_v16 = vmul.f32 %v264_v63, %v1219_v49  ;;  %v119_v63 = vpop.f32.mrf.mxu3 }
  0xac   :  { %v251_v25 = vadd.f32 0.05243302, %v250_v10  ;;  %v189_v36 = vsub.f32 1.0, %v188_v15  ;;  %v213_v47 = vadd.f32 0.18741608, %v212_v19  ;;  %v581_v60 = vmul.f32 %v580_v21, %v1263_v27 }
  0xad   :  { %v1260_v22 = vmul.f32 0.70710677, %v1247_v12  ;;  %v302_v57 = vadd.f32 0.112945676, %v301_v45  ;;  %v338_v0 = vadd.f32 0.001143296, %v337_v52  ;;  %v174_v45 = vmul.f32 %v173_v18, %v1193_v33 }
  0xae   :  { %v1313_v50 = vpop.eup %1029  ;;  %v1319_v52 = vmul.f32 0.5, %v1191_v31  ;;  %v252_v33 = vmul.f32 %v251_v25, %v1219_v49  ;;  %v190_v28 = vmul.f32 %v1285_v3, %v189_v36  ;;  %v288_v31 = vmul.f32 %v287_v32, %v1226_v55 }
  0xaf   :  { %v364_v39 = vmul.f32 %v1260_v22, %v1260_v22  ;;  %v303_v6 = vmul.f32 %v302_v57, %v1226_v55  ;;  %v339_v17 = vmul.f32 %v338_v0, %v1267_v38  ;;  %v1324_v57 = vmul.f32 0.5, %v1202_v37  ;;  %v1017_v0 = vld [vmem:[%s1982_s3] sm:$0xff] }
  0xb0   :  { %v175_v37 = vadd.f32 1.1283791, %v174_v45  ;;  %v228_v4 = vmul.f32 %v1313_v50, %v1282_v59  ;;  %896 = vmatpush.bf16.msra.mxu1 %v1017_v0  ;;  %1021 = vmatpush.bf16.msra.mxu2 %v1017_v0  ;;  %v1351_v15 = vadd.f32 %v1180_v26, %v119_v63  ;;  %v289_v18 = vadd.f32 0.0036580483, %v288_v31 }
  0xb1   :  { %v1279_v53 = vmin.f32 %v364_v39, 16.0  ;;  %v304_v20 = vadd.f32 0.4994258, %v303_v6  ;;  %v1306_v39 = vadd.f32 1.0, %v265_v16  ;;  %v340_v43 = vadd.f32 0.014752088, %v339_v17 }
  0xb2   :  { %v107_v61 = vpop.f32.mrf.mxu0  ;;  %v196_v6 = vand.u32 2147483647, %v1265_v30  ;;  %v191_v16 = vadd.f32 %v1285_v3, %v190_v28  ;;  %v253_v17 = vadd.f32 0.18741608, %v252_v33  ;;  %v229_v21 = vsub.f32 1.0, %v228_v4 }
  0xb3   :  { %v377_v1 = vmul.f32 3.8918573e-05, %v1279_v53  ;;  %v1291_v9 = vadd.f32 %v1180_v26, %v107_v61  ;;  %v305_v48 = vmul.f32 %v304_v20, %v1226_v55  ;;  %1031 = vrcp.f32 %v1306_v39 }
  0xb4   :  { %v341_v61 = vmul.f32 %v340_v43, %v1267_v38  ;;  %vm1358_vm3 = vcmp.eq.f32.partialorder %v196_v6, 8.507059e+37  ;;  %v199_v25 = vor.u32 1.1754944e-38, %v198_v8  ;;  %v176_v36 = vmul.f32 %v175_v37, %v1186_v29 }
  0xb5   :  { %v378_v14 = vadd.f32 0.001143296, %v377_v1  ;;  %v1303_v24 = vmul.f32 0.70710677, %v1291_v9  ;;  %v214_v1 = vmul.f32 %v213_v47, %v1204_v40  ;;  %v1338_v5 = vadd.f32 1.0, %v305_v48 }
  0xb6   :  { %v568_v40 = vmul.f32 %v567_v58, %v1263_v27  ;;  %v342_v19 = vadd.f32 0.112945676, %v341_v61  ;;  %v236_v43 = vand.u32 2147483647, %v1282_v59  ;;  %v326_v45 = vmul.f32 2.1237322e-06, %v1267_v38 }
  0xb7   :  { %v379_v23 = vmul.f32 %v378_v14, %v1279_v53  ;;  %v404_v56 = vmul.f32 %v1303_v24, %v1303_v24  ;;  %v1347_v14 = vmul.f32 0.5, %v1210_v42  ;;  %v215_v20 = vadd.f32 1.1283791, %v214_v1 }
  0xb8   :  { %1033 = vrcp.f32 %v1338_v5  ;;  %v569_v44 = vadd.f32 0.0036580483, %v568_v40  ;;  %v195_v47 = vsel %vm1366_vm4, %v1285_v3, %v191_v16  ;;  %v254_v48 = vmul.f32 %v253_v17, %v1219_v49 }
  0xb9   :  { %v380_v54 = vadd.f32 0.014752088, %v379_v23  ;;  %v1343_v13 = vmin.f32 %v404_v56, 16.0  ;;  %v1356_v23 = vpop.eup %1031  ;;  %v343_v29 = vmul.f32 %v342_v19, %v1267_v38  ;;  %v1379_v56 = vmul.f32 %v215_v20, %v1196_v34 }
  0xba   :  { %v230_v33 = vmul.f32 %v1313_v50, %v229_v21  ;;  %v268_v58 = vmul.f32 %v1356_v23, %v1306_v39  ;;  %v582_v28 = vadd.f32 0.112945676, %v581_v60  ;;  %v238_v31 = vand.u32 2147483648, %v1282_v59 }
  0xbb   :  { %v381_v10 = vmul.f32 %v380_v54, %v1279_v53  ;;  %v417_v35 = vmul.f32 3.8918573e-05, %v1343_v13  ;;  %v290_v54 = vmul.f32 %v289_v18, %v1226_v55  ;;  %v200_v63 = vsel %vm1358_vm3, %v199_v25, %v195_v47 }
  0xbc   :  { %vm1391_vm6 = vcmp.eq.f32.partialorder %v236_v43, 8.507059e+37  ;;  %v570_v0 = vmul.f32 %v569_v44, %v1263_v27  ;;  %v327_v37 = vadd.f32 0.00028619796, %v326_v45  ;;  %vm233_vm7 = vweird.f32 %v1313_v50 }
  0xbd   :  { %v382_v32 = vadd.f32 0.112945676, %v381_v10  ;;  %v418_v49 = vadd.f32 0.001143296, %v417_v35  ;;  %v255_v60 = vadd.f32 1.1283791, %v254_v48  ;;  %v231_v6 = vadd.f32 %v1313_v50, %v230_v33  ;;  %vm1414_vm8 = vmor %vm232_vm5, %vm233_vm7 }
  0xbe   :  { %v1387_v61 = vpop.eup %1033  ;;  %v291_v1 = vadd.f32 0.05243302, %v290_v54  ;;  %v344_v4 = vadd.f32 0.4994258, %v343_v29  ;;  %v269_v8 = vsub.f32 1.0, %v268_v58  ;;  %v583_v17 = vmul.f32 %v582_v28, %v1263_v27  ;;  %v109_v29 = vpop.f32.mrf.mxu0 }
  0xbf   :  { %v383_v3 = vmul.f32 %v382_v32, %v1279_v53  ;;  %v1399_v10 = vmul.f32 0.70710677, %v1351_v15  ;;  %v366_v40 = vmul.f32 2.1237322e-06, %v1279_v53  ;;  %v308_v16 = vmul.f32 %v1387_v61, %v1338_v5 }
  0xc0   :  { %v419_v19 = vmul.f32 %v418_v49, %v1343_v13  ;;  %v201_v20 = vmul.f32 %v200_v63, %v176_v36  ;;  %v239_v21 = vor.u32 1.1754944e-38, %v238_v31  ;;  %v1407_v42 = vmul.f32 0.5, %v1237_v2 }
  0xc1   :  { %v384_v18 = vadd.f32 0.4994258, %v383_v3  ;;  %v328_v25 = vmul.f32 %v327_v37, %v1267_v38  ;;  %v1419_v35 = vmul.f32 %v255_v60, %v1207_v41  ;;  %v292_v30 = vmul.f32 %v291_v1, %v1226_v55 }
  0xc2   :  { %v571_v36 = vadd.f32 0.05243302, %v570_v0  ;;  %v345_v43 = vmul.f32 %v344_v4, %v1267_v38  ;;  %v235_v2 = vsel %vm1414_vm8, %v1313_v50, %v231_v6  ;;  %v270_v44 = vmul.f32 %v1356_v23, %v269_v8 }
  0xc3   :  { %v604_v59 = vmul.f32 %v1399_v10, %v1399_v10  ;;  %v367_v45 = vadd.f32 0.00028619796, %v366_v40  ;;  %v309_v47 = vsub.f32 1.0, %v308_v16  ;;  %v584_v48 = vadd.f32 0.4994258, %v583_v17 }
  0xc4   :  { %v385_v41 = vmul.f32 %v384_v18, %v1279_v53  ;;  %v420_v54 = vadd.f32 0.014752088, %v419_v19  ;;  %v984_v33 = vclamps-f32 %v201_v20, 1.0  ;;  %v276_v58 = vand.u32 2147483647, %v1306_v39 }
  0xc5   :  { %v278_v28 = vand.u32 2147483648, %v1306_v39  ;;  %v329_v31 = vadd.f32 0.0036580483, %v328_v25  ;;  %v240_v50 = vsel %vm1391_vm6, %v239_v21, %v235_v2  ;;  %vm273_vm9 = vweird.f32 %v1356_v23 }
  0xc6   :  { %v293_v3 = vadd.f32 0.18741608, %v292_v30  ;;  %v1435_v49 = vadd.f32 1.0, %v345_v43  ;;  %v271_v63 = vadd.f32 %v1356_v23, %v270_v44  ;;  %v1438_v0 = vmin.f32 %v604_v59, 16.0  ;;  %v122_v59 = vpop.f32.mrf.mxu3 }
  0xc7   :  { %v368_v37 = vmul.f32 %v367_v45, %v1279_v53  ;;  %v1442_v60 = vadd.f32 %v1180_v26, %v109_v29  ;;  %v310_v1 = vmul.f32 %v1387_v61, %v309_v47  ;;  %v1446_v4 = vmul.f32 %v571_v36, %v1263_v27 }
  0xc8   :  { %v1448_v34 = vadd.f32 1.0, %v385_v41  ;;  %v421_v6 = vmul.f32 %v420_v54, %v1343_v13  ;;  %v804_v8 = vadd.f32 1.0, %v984_v33  ;;  %vm272_vm10 = vweird.f32 %v1306_v39 }
  0xc9   :  { %vm1452_vm11 = vcmp.eq.f32.partialorder %v276_v58, 8.507059e+37  ;;  %v330_v16 = vmul.f32 %v329_v31, %v1267_v38  ;;  %v241_v17 = vmul.f32 %v240_v50, %v1379_v56  ;;  %vm1460_vm12 = vmor %vm272_vm10, %vm273_vm9  ;;  %v279_v19 = vor.u32 1.1754944e-38, %v278_v28 }
  0xca   :  { %v294_v20 = vmul.f32 %v293_v3, %v1226_v55  ;;  %1035 = vrcp.f32 %v1435_v49  ;;  %v275_v39 = vsel %vm1460_vm12, %v1356_v23, %v271_v63  ;;  %v617_v21 = vmul.f32 3.8918573e-05, %v1438_v0 }
  0xcb   :  { %v369_v25 = vadd.f32 0.0036580483, %v368_v37  ;;  %v1471_v56 = vmul.f32 0.70710677, %v1442_v60  ;;  %v311_v32 = vadd.f32 %v1387_v61, %v310_v1  ;;  %vm313_vm13 = vweird.f32 %v1387_v61 }
  0xcc   :  { %1037 = vrcp.f32 %v1448_v34  ;;  %v422_v30 = vadd.f32 0.112945676, %v421_v6  ;;  %v316_v55 = vand.u32 2147483647, %v1338_v5  ;;  %v318_v36 = vand.u32 2147483648, %v1338_v5 }
  0xcd   :  { %v331_v43 = vadd.f32 0.05243302, %v330_v16  ;;  %v444_v23 = vmul.f32 %v1471_v56, %v1471_v56  ;;  %v280_v2 = vsel %vm1452_vm11, %v279_v19, %v275_v39  ;;  %vm312_vm14 = vweird.f32 %v1338_v5 }
  0xce   :  { %v585_v44 = vmul.f32 %v584_v48, %v1263_v27  ;;  %v406_v45 = vmul.f32 2.1237322e-06, %v1343_v13  ;;  %v1486_v47 = vmul.f32 %v804_v8, %v1316_v51  ;;  %vm1488_vm15 = vmor %vm312_vm14, %vm313_vm13  ;;  %v618_v54 = vadd.f32 0.001143296, %v617_v21 }
  0xcf   :  { %v370_v29 = vmul.f32 %v369_v25, %v1279_v53  ;;  %v1493_v33 = vmin.f32 %v444_v23, 16.0  ;;  %v985_v5 = vclamps-f32 %v241_v17, 1.0  ;;  %v295_v28 = vadd.f32 1.1283791, %v294_v20 }
  0xd0   :  { %v1495_v58 = vpop.eup %1035  ;;  %v315_v48 = vsel %vm1488_vm15, %v1387_v61, %v311_v32  ;;  %v423_v51 = vmul.f32 %v422_v30, %v1343_v13  ;;  %v281_v31 = vmul.f32 %v280_v2, %v1419_v35  ;;  %vm317_vm0 = vcmp.eq.f32.partialorder %v316_v55, 8.507059e+37 }
  0xd1   :  { %v319_v50 = vor.u32 1.1754944e-38, %v318_v36  ;;  %v332_v3 = vmul.f32 %v331_v43, %v1267_v38  ;;  %v606_v37 = vmul.f32 2.1237322e-06, %v1438_v0  ;;  %v1507_v1 = vadd.f32 %v1180_v26, %v122_v59 }
  0xd2   :  { %v1503_v63 = vpop.eup %1037  ;;  %v407_v6 = vadd.f32 0.00028619796, %v406_v45  ;;  %v457_v8 = vmul.f32 3.8918573e-05, %v1493_v33  ;;  %v348_v61 = vmul.f32 %v1495_v58, %v1435_v49  ;;  %v619_v35 = vmul.f32 %v618_v54, %v1438_v0  ;;  %v124_v54 = vpop.f32.mrf.mxu3 }
  0xd3   :  { %v320_v40 = vsel %vm317_vm0, %v319_v50, %v315_v48  ;;  %v371_v16 = vadd.f32 0.05243302, %v370_v29  ;;  %v296_v17 = vmul.f32 %v295_v28, %v1217_v46  ;;  %v424_v18 = vadd.f32 0.4994258, %v423_v51 }
  0xd4   :  { %v446_v19 = vmul.f32 2.1237322e-06, %v1493_v33  ;;  %v458_v20 = vadd.f32 0.001143296, %v457_v8  ;;  %v805_v39 = vadd.f32 1.0, %v985_v5  ;;  %v986_v21 = vclamps-f32 %v281_v31, 1.0 }
  0xd5   :  { %v333_v25 = vadd.f32 0.18741608, %v332_v3  ;;  %v388_v32 = vmul.f32 %v1503_v63, %v1448_v34  ;;  %v321_v30 = vmul.f32 %v320_v40, %v296_v17  ;;  %v607_v55 = vadd.f32 0.00028619796, %v606_v37 }
  0xd6   :  { %v408_v36 = vmul.f32 %v407_v6, %v1343_v13  ;;  %v459_v43 = vmul.f32 %v458_v20, %v1493_v33  ;;  %v1519_v23 = vadd.f32 1.0, %v585_v44  ;;  %v349_v2 = vsub.f32 1.0, %v348_v61  ;;  %v112_v61 = vpop.f32.mrf.mxu0 }
  0xd7   :  { %v620_v46 = vadd.f32 0.014752088, %v619_v35  ;;  %v1522_v59 = vmul.f32 0.70710677, %v1507_v1  ;;  %v372_v45 = vmul.f32 %v371_v16, %v1279_v53  ;;  %v425_v41 = vmul.f32 %v424_v18, %v1343_v13 }
  0xd8   :  { %v447_v29 = vadd.f32 0.00028619796, %v446_v19  ;;  %v460_v5 = vadd.f32 0.014752088, %v459_v43  ;;  %v821_v28 = vmul.f32 %v805_v39, %v1319_v52  ;;  %v1527_v48 = vadd.f32 1.0, %v986_v21 }
  0xd9   :  { %v334_v51 = vmul.f32 %v333_v25, %v1267_v38  ;;  %v389_v44 = vsub.f32 1.0, %v388_v32  ;;  %v987_v31 = vclamps-f32 %v321_v30, 1.0  ;;  %v1531_v50 = vmul.f32 %v607_v55, %v1438_v0 }
  0xda   :  { %v409_v3 = vadd.f32 0.0036580483, %v408_v36  ;;  %v461_v37 = vmul.f32 %v460_v5, %v1493_v33  ;;  %v350_v6 = vmul.f32 %v1495_v58, %v349_v2  ;;  %v621_v8 = vmul.f32 %v620_v46, %v1438_v0 }
  0xdb   :  { %v644_v40 = vmul.f32 %v1522_v59, %v1522_v59  ;;  %v1539_v52 = vadd.f32 %v1180_v26, %v124_v54  ;;  %v373_v38 = vadd.f32 0.18741608, %v372_v45  ;;  %v1541_v35 = vadd.f32 1.0, %v425_v41 }
  0xdc   :  { %v448_v16 = vmul.f32 %v447_v29, %v1493_v33  ;;  %v462_v17 = vadd.f32 0.112945676, %v461_v37  ;;  %v335_v18 = vadd.f32 1.1283791, %v334_v51  ;;  %vm352_vm1 = vweird.f32 %v1435_v49 }
  0xdd   :  { %v356_v19 = vand.u32 2147483647, %v1435_v49  ;;  %v390_v20 = vmul.f32 %v1503_v63, %v389_v44  ;;  %v358_v39 = vand.u32 2147483648, %v1435_v49  ;;  %v410_v21 = vmul.f32 %v409_v3, %v1343_v13 }
  0xde   :  { %v1550_v25 = vadd.f32 %v1180_v26, %v112_v61  ;;  %v836_v32 = vpack.c.bf16 %v821_v28, %v1486_v47  ;;  %v351_v30 = vadd.f32 %v1495_v58, %v350_v6  ;;  %vm353_vm2 = vweird.f32 %v1495_v58  ;;  %v114_v54 = vpop.f32.mrf.mxu0 }
  0xdf   :  { %v1555_v55 = vmin.f32 %v644_v40, 16.0  ;;  %v463_v36 = vmul.f32 %v462_v17, %v1493_v33  ;;  %v374_v43 = vmul.f32 %v373_v38, %v1279_v53  ;;  %1039 = vrcp.f32 %v1541_v35  ;;  %vm1567_vm5 = vmor %vm352_vm1, %vm353_vm2 }
  0xe0   :  { %v1561_v2 = vmul.f32 0.70710677, %v1539_v52  ;;  %v449_v46 = vadd.f32 0.0036580483, %v448_v16  ;;  %v391_v45 = vadd.f32 %v1503_v63, %v390_v20  ;;  %vm393_vm3 = vweird.f32 %v1503_v63  ;;  %v127_v20 = vpop.f32.mrf.mxu3 }
  0xe1   :  { %v464_v47 = vadd.f32 0.4994258, %v463_v36  ;;  %vm864_vm4 = vcmask 261120   ;;  %v807_v41 = vadd.f32 1.0, %v987_v31  ;;  %v398_v53 = vand.u32 2147483648, %v1448_v34 }
  0xe2   :  { %v411_v29 = vadd.f32 0.05243302, %v410_v21  ;;  %v1573_v5 = vmul.f32 0.70710677, %v1550_v25  ;;  %1008 = vmatmul.msk.bf16.vlgmr.msra.gmra.mxu1 %vm864_vm4, %v836_v32  ;;  %v355_v28 = vsel %vm1567_vm5, %v1495_v58, %v351_v30  ;;  %vm392_vm6 = vweird.f32 %v1448_v34 }
  0xe3   :  { %v396_v49 = vand.u32 2147483647, %v1448_v34  ;;  %v465_v51 = vmul.f32 %v464_v47, %v1493_v33  ;;  %vm357_vm7 = vcmp.eq.f32.partialorder %v356_v19, 8.507059e+37  ;;  %v359_v44 = vor.u32 1.1754944e-38, %v358_v39  ;;  %vm1584_vm8 = vmor %vm392_vm6, %vm393_vm3 }
  0xe4   :  { %v657_v3 = vmul.f32 3.8918573e-05, %v1555_v55  ;;  %v450_v37 = vmul.f32 %v449_v46, %v1493_v33  ;;  %v375_v6 = vadd.f32 1.1283791, %v374_v43  ;;  %v395_v58 = vsel %vm1584_vm8, %v1503_v63, %v391_v45 }
  0xe5   :  { %v1593_v34 = vadd.f32 1.0, %v465_v51  ;;  %v484_v40 = vmul.f32 %v1573_v5, %v1573_v5  ;;  %v1597_v61 = vpop.eup %1039  ;;  %v360_v38 = vsel %vm357_vm7, %v359_v44, %v355_v28  ;;  %v399_v16 = vor.u32 1.1754944e-38, %v398_v53 }
  0xe6   :  { %v412_v17 = vmul.f32 %v411_v29, %v1343_v13  ;;  %v684_v19 = vmul.f32 %v1561_v2, %v1561_v2  ;;  %v336_v39 = vmul.f32 %v335_v18, %v1244_v11  ;;  %v622_v21 = vadd.f32 0.112945676, %v621_v8 }
  0xe7   :  { %vm397_vm9 = vcmp.eq.f32.partialorder %v396_v49, 8.507059e+37  ;;  %1041 = vrcp.f32 %v1593_v34  ;;  %v658_v32 = vadd.f32 0.001143296, %v657_v3  ;;  %v451_v30 = vadd.f32 0.05243302, %v450_v37 }
  0xe8   :  { %v400_v63 = vsel %vm397_vm9, %v399_v16, %v395_v58  ;;  %v1604_v36 = vmin.f32 %v484_v40, 16.0  ;;  %v1607_v43 = vadd.f32 0.18741608, %v1446_v4  ;;  %v361_v46 = vmul.f32 %v360_v38, %v336_v39 }
  0xe9   :  { %v376_v45 = vmul.f32 %v375_v6, %v1260_v22  ;;  %v428_v47 = vmul.f32 %v1597_v61, %v1541_v35  ;;  %v823_v11 = vmul.f32 %v807_v41, %v1347_v14  ;;  %1043 = vrcp.f32 %v1519_v23 }
  0xea   :  { %v413_v8 = vadd.f32 0.18741608, %v412_v17  ;;  %v1614_v18 = vmin.f32 %v684_v19, 16.0  ;;  %v609_v53 = vadd.f32 0.0036580483, %v1531_v50  ;;  %v623_v29 = vmul.f32 %v622_v21, %v1438_v0  ;;  %v129_v21 = vpop.f32.mrf.mxu3 }
  0xeb   :  { %v401_v4 = vmul.f32 %v400_v63, %v376_v45  ;;  %v497_v28 = vmul.f32 3.8918573e-05, %v1604_v36  ;;  %v822_v22 = vmul.f32 %v1527_v48, %v1324_v57  ;;  %v137_v49 = vmul.f32 0.5, %v1247_v12 }
  0xec   :  { %v659_v14 = vmul.f32 %v658_v32, %v1555_v55  ;;  %v452_v41 = vmul.f32 %v451_v30, %v1493_v33  ;;  %v988_v44 = vclamps-f32 %v361_v46, 1.0  ;;  %v429_v31 = vsub.f32 1.0, %v428_v47 }
  0xed   :  { %v1624_v51 = vpop.eup %1041  ;;  %v498_v3 = vadd.f32 0.001143296, %v497_v28  ;;  %v1627_v50 = vadd.f32 %v1180_v26, %v114_v54  ;;  %v414_v37 = vmul.f32 %v413_v8, %v1343_v13  ;;  %v697_v6 = vmul.f32 3.8918573e-05, %v1614_v18 }
  0xee   :  { %v468_v57 = vmul.f32 %v1624_v51, %v1593_v34  ;;  %v837_v12 = vpack.c.bf16 %v823_v11, %v822_v22  ;;  %v1634_v48 = vmul.f32 %v609_v53, %v1438_v0  ;;  %v1636_v58 = vadd.f32 0.4994258, %v623_v29 }
  0xef   :  { %v989_v40 = vclamps-f32 %v401_v4, 1.0  ;;  %v499_v38 = vmul.f32 %v498_v3, %v1604_v36  ;;  %v1639_v16 = vpop.eup %1043  ;;  %v1641_v17 = vadd.f32 0.014752088, %v659_v14  ;;  %v453_v19 = vadd.f32 0.18741608, %v452_v41 }
  0xf0   :  { %v469_v13 = vsub.f32 1.0, %v468_v57  ;;  %v1644_v39 = vadd.f32 %v1180_v26, %v127_v20  ;;  %v808_v63 = vadd.f32 1.0, %v988_v44  ;;  %v430_v32 = vmul.f32 %v1597_v61, %v429_v31 }
  0xf1   :  { %v500_v30 = vadd.f32 0.014752088, %v499_v38  ;;  %v1648_v46 = vmul.f32 0.70710677, %v1627_v50  ;;  %v415_v45 = vadd.f32 1.1283791, %v414_v37  ;;  %v1656_v29 = vadd.f32 %v1180_v26, %v129_v21 }
  0xf2   :  { %v698_v47 = vadd.f32 0.001143296, %v697_v6  ;;  %v470_v11 = vmul.f32 %v1624_v51, %v469_v13  ;;  %v486_v8 = vmul.f32 2.1237322e-06, %v1604_v36  ;;  %1009 = vmatmul.msk.bf16.gmra.mxu1 %vm864_vm4, %v837_v12  ;;  %v809_v54 = vadd.f32 1.0, %v989_v40 }
  0xf3   :  { %v438_v20 = vand.u32 2147483648, %v1541_v35  ;;  %v501_v53 = vmul.f32 %v500_v30, %v1604_v36  ;;  %v454_v4 = vmul.f32 %v453_v19, %v1493_v33  ;;  %vm473_vm10 = vweird.f32 %v1624_v51 }
  0xf4   :  { %v471_v28 = vadd.f32 %v1624_v51, %v470_v11  ;;  %v1662_v22 = vmul.f32 0.70710677, %v1644_v39  ;;  %v431_v14 = vadd.f32 %v1597_v61, %v430_v32  ;;  %vm433_vm11 = vweird.f32 %v1597_v61 }
  0xf5   :  { %v478_v41 = vand.u32 2147483648, %v1593_v34  ;;  %v524_v44 = vmul.f32 %v1648_v46, %v1648_v46  ;;  %vm472_vm12 = vweird.f32 %v1593_v34  ;;  %v476_v26 = vand.u32 2147483647, %v1593_v34 }
  0xf6   :  { %v487_v33 = vadd.f32 0.00028619796, %v486_v8  ;;  %v502_v31 = vadd.f32 0.112945676, %v501_v53  ;;  %vm432_vm13 = vweird.f32 %v1541_v35  ;;  %v436_v3 = vand.u32 2147483647, %v1541_v35  ;;  %vm1674_vm14 = vmor %vm472_vm12, %vm473_vm10 }
  0xf7   :  { %v699_v37 = vmul.f32 %v698_v47, %v1614_v18  ;;  %v1679_v57 = vmul.f32 0.70710677, %v1656_v29  ;;  %v439_v12 = vor.u32 1.1754944e-38, %v438_v20  ;;  %v455_v40 = vadd.f32 1.1283791, %v454_v4  ;;  %vm1687_vm15 = vmor %vm432_vm13, %vm433_vm11 }
  0xf8   :  { %v475_v34 = vsel %vm1674_vm14, %v1624_v51, %v471_v28  ;;  %v503_v38 = vmul.f32 %v502_v31, %v1604_v36  ;;  %v825_v19 = vmul.f32 %v809_v54, %v137_v49  ;;  %v479_v13 = vor.u32 1.1754944e-38, %v478_v41 }
  0xf9   :  { %v724_v21 = vmul.f32 %v1662_v22, %v1662_v22  ;;  %v1693_v32 = vmin.f32 %v524_v44, 16.0  ;;  %v435_v30 = vsel %vm1687_vm15, %v1597_v61, %v431_v14  ;;  %vm477_vm0 = vcmp.eq.f32.partialorder %v476_v26, 8.507059e+37 }
  0xfa   :  { %v488_v51 = vmul.f32 %v487_v33, %v1604_v36  ;;  %v504_v49 = vadd.f32 0.4994258, %v503_v38  ;;  %v480_v47 = vsel %vm477_vm0, %v479_v13, %v475_v34  ;;  %v764_v11 = vmul.f32 %v1679_v57, %v1679_v57 }
  0xfb   :  { %v526_v8 = vmul.f32 2.1237322e-06, %v1693_v32  ;;  %v537_v54 = vmul.f32 3.8918573e-05, %v1693_v32  ;;  %v824_v20 = vmul.f32 %v808_v63, %v1407_v42  ;;  %v416_v53 = vmul.f32 %v415_v45, %v1303_v24 }
  0xfc   :  { %vm437_vm1 = vcmp.eq.f32.partialorder %v436_v3, 8.507059e+37  ;;  %v456_v4 = vmul.f32 %v455_v40, %v1471_v56  ;;  %v1706_v28 = vmin.f32 %v724_v21, 16.0  ;;  %v505_v14 = vmul.f32 %v504_v49, %v1604_v36 }
  0xfd   :  { %v440_v61 = vsel %vm437_vm1, %v439_v12, %v435_v30  ;;  %v527_v41 = vadd.f32 0.00028619796, %v526_v8  ;;  %v489_v26 = vadd.f32 0.0036580483, %v488_v51  ;;  %v538_v33 = vadd.f32 0.001143296, %v537_v54 }
  0xfe   :  { %v481_v44 = vmul.f32 %v480_v47, %v456_v4  ;;  %v838_v31 = vpack.c.bf16 %v825_v19, %v824_v20  ;;  %v700_v6 = vadd.f32 0.014752088, %v699_v37  ;;  %v1709_v34 = vadd.f32 1.0, %v505_v14 }
  0xff   :  { %v1711_v38 = vmin.f32 %v764_v11, 16.0  ;;  %v528_v24 = vmul.f32 %v527_v41, %v1693_v32  ;;  %v574_v42 = vmul.f32 %v1607_v43, %v1263_v27  ;;  %v625_v56 = vmul.f32 %v1636_v58, %v1438_v0 }
 0x100   :  { %v441_v63 = vmul.f32 %v440_v61, %v416_v53  ;;  %v539_v45 = vmul.f32 %v538_v33, %v1693_v32  ;;  %v588_v3 = vmul.f32 %v1639_v16, %v1519_v23  ;;  %v596_v37 = vand.u32 2147483647, %v1519_v23 }
 0x101   :  { %v661_v12 = vmul.f32 %v1641_v17, %v1555_v55  ;;  %1045 = vrcp.f32 %v1709_v34  ;;  %v611_v40 = vadd.f32 0.05243302, %v1634_v48  ;;  %v991_v19 = vclamps-f32 %v481_v44, 1.0 }
 0x102   :  { %v737_v27 = vmul.f32 3.8918573e-05, %v1706_v28  ;;  %v490_v43 = vmul.f32 %v489_v26, %v1604_v36  ;;  %1010 = vmatmul.msk.bf16.gmra.mxu1 %vm864_vm4, %v838_v31  ;;  %v701_v58 = vmul.f32 %v700_v6, %v1614_v18  ;;  %v777_v35 = vmul.f32 3.8918573e-05, %v1711_v38 }
 0x103   :  { %v529_v13 = vadd.f32 0.0036580483, %v528_v24  ;;  %v540_v21 = vadd.f32 0.014752088, %v539_v45  ;;  %v575_v30 = vadd.f32 1.1283791, %v574_v42  ;;  %vm592_vm2 = vweird.f32 %v1519_v23 }
 0x104   :  { %v598_v17 = vand.u32 2147483648, %v1519_v23  ;;  %v1732_v51 = vadd.f32 1.0, %v625_v56  ;;  %v990_v49 = vclamps-f32 %v441_v63, 1.0  ;;  %v589_v48 = vsub.f32 1.0, %v588_v3 }
 0x105   :  { %v646_v47 = vmul.f32 2.1237322e-06, %v1555_v55  ;;  %v662_v11 = vadd.f32 0.112945676, %v661_v12  ;;  %v541_v8 = vmul.f32 %v540_v21, %v1693_v32  ;;  %v612_v54 = vmul.f32 %v611_v40, %v1438_v0 }
 0x106   :  { %v811_v20 = vadd.f32 1.0, %v991_v19  ;;  %v738_v53 = vadd.f32 0.001143296, %v737_v27  ;;  %v491_v4 = vadd.f32 0.05243302, %v490_v43  ;;  %v530_v44 = vmul.f32 %v529_v13, %v1693_v32 }
 0x107   :  { %v1738_v61 = vpop.eup %1045  ;;  %v702_v14 = vadd.f32 0.112945676, %v701_v58  ;;  %v778_v41 = vadd.f32 0.001143296, %v777_v35  ;;  %v542_v26 = vadd.f32 0.112945676, %v541_v8  ;;  %1047 = vrcp.f32 %v1732_v51 }
 0x108   :  { %v810_v33 = vadd.f32 1.0, %v990_v49  ;;  %v139_v31 = vmul.f32 0.5, %v1442_v60  ;;  %v508_v6 = vmul.f32 %v1738_v61, %v1709_v34  ;;  %v1746_v24 = vmul.f32 %v575_v30, %v1241_v7 }
 0x109   :  { %v663_v42 = vmul.f32 %v662_v11, %v1555_v55  ;;  %v138_v56 = vmul.f32 0.5, %v1291_v9  ;;  %v543_v63 = vmul.f32 %v542_v26, %v1693_v32  ;;  %v739_v3 = vmul.f32 %v738_v53, %v1706_v28 }
 0x10a   :  { %v827_v45 = vmul.f32 %v811_v20, %v139_v31  ;;  %v492_v12 = vmul.f32 %v491_v4, %v1604_v36  ;;  %v509_v40 = vsub.f32 1.0, %v508_v6  ;;  %v703_v60 = vmul.f32 %v702_v14, %v1614_v18 }
 0x10b   :  { %v779_v19 = vmul.f32 %v778_v41, %v1711_v38  ;;  %v531_v27 = vadd.f32 0.05243302, %v530_v44  ;;  %v544_v43 = vadd.f32 0.4994258, %v543_v63  ;;  %v590_v7 = vmul.f32 %v1639_v16, %v589_v48 }
 0x10c   :  { %v613_v58 = vadd.f32 0.18741608, %v612_v54  ;;  %v647_v35 = vadd.f32 0.00028619796, %v646_v47  ;;  %v826_v13 = vmul.f32 %v810_v33, %v138_v56  ;;  %vm593_vm3 = vweird.f32 %v1639_v16 }
 0x10d   :  { %v664_v9 = vadd.f32 0.4994258, %v663_v42  ;;  %v686_v21 = vmul.f32 2.1237322e-06, %v1614_v18  ;;  %v545_v30 = vmul.f32 %v544_v43, %v1693_v32  ;;  %v1759_v49 = vpop.eup %1047  ;;  %v740_v11 = vadd.f32 0.014752088, %v739_v3  ;;  %vm1776_vm5 = vmor %vm592_vm2, %vm593_vm3 }
 0x10e   :  { %v493_v8 = vadd.f32 0.18741608, %v492_v12  ;;  %v510_v20 = vmul.f32 %v1738_v61, %v509_v40  ;;  %v839_v53 = vpack.c.bf16 %v827_v45, %v826_v13  ;;  %v704_v4 = vadd.f32 0.4994258, %v703_v60 }
 0x10f   :  { %v780_v14 = vadd.f32 0.014752088, %v779_v19  ;;  %v532_v48 = vmul.f32 %v531_v27, %v1693_v32  ;;  %v1763_v47 = vadd.f32 1.0, %v545_v30  ;;  %v1766_v54 = vadd.f32 %v1639_v16, %v590_v7 }
 0x110   :  { %v1768_v41 = vor.u32 1.1754944e-38, %v598_v17  ;;  %v614_v44 = vmul.f32 %v613_v58, %v1438_v0  ;;  %v648_v26 = vmul.f32 %v647_v35, %v1555_v55  ;;  %v628_v31 = vmul.f32 %v1759_v49, %v1732_v51 }
 0x111   :  { %v665_v6 = vmul.f32 %v664_v9, %v1555_v55  ;;  %v687_v42 = vadd.f32 0.00028619796, %v686_v21  ;;  %1049 = vrcp.f32 %v1763_v47  ;;  %v741_v0 = vmul.f32 %v740_v11, %v1706_v28 }
 0x112   :  { %v494_v17 = vmul.f32 %v493_v8, %v1604_v36  ;;  %v511_v56 = vadd.f32 %v1738_v61, %v510_v20  ;;  %vm513_vm6 = vweird.f32 %v1738_v61  ;;  %1011 = vmatmul.msk.bf16.gmra.mxu1 %vm864_vm4, %v839_v53  ;;  %v705_v63 = vmul.f32 %v704_v4, %v1614_v18 }
 0x113   :  { %v518_v45 = vand.u32 2147483648, %v1709_v34  ;;  %v781_v3 = vmul.f32 %v780_v14, %v1711_v38  ;;  %v533_v12 = vadd.f32 0.18741608, %v532_v48  ;;  %v595_v40 = vsel %vm1776_vm5, %v1639_v16, %v1766_v54 }
 0x114   :  { %v1796_v60 = vadd.f32 1.1283791, %v614_v44  ;;  %vm512_vm7 = vweird.f32 %v1709_v34  ;;  %v516_v36 = vand.u32 2147483647, %v1709_v34  ;;  %v629_v19 = vsub.f32 1.0, %v628_v31 }
 0x115   :  { %vm632_vm8 = vweird.f32 %v1732_v51  ;;  %v649_v27 = vadd.f32 0.0036580483, %v648_v26  ;;  %v688_v43 = vmul.f32 %v687_v42, %v1614_v18  ;;  %vm1802_vm9 = vmor %vm512_vm7, %vm513_vm6  ;;  %v1806_v58 = vadd.f32 1.0, %v665_v6 }
 0x116   :  { %v742_v35 = vadd.f32 0.112945676, %v741_v0  ;;  %v495_v13 = vadd.f32 1.1283791, %v494_v17  ;;  %v515_v9 = vsel %vm1802_vm9, %v1738_v61, %v511_v56  ;;  %v1811_v34 = vadd.f32 1.0, %v705_v63 }
 0x117   :  { %v1050_v21 = vpop.eup %1049  ;;  %v519_v30 = vor.u32 1.1754944e-38, %v518_v45  ;;  %v782_v11 = vadd.f32 0.112945676, %v781_v3  ;;  %v534_v8 = vmul.f32 %v533_v12, %v1693_v32  ;;  %vm1816_vm10 = vcmp.eq.f32.partialorder %v596_v37, 8.507059e+37 }
 0x118   :  { %vm633_vm11 = vweird.f32 %v1759_v49  ;;  %v636_v53 = vand.u32 2147483647, %v1732_v51  ;;  %vm517_vm12 = vcmp.eq.f32.partialorder %v516_v36, 8.507059e+37  ;;  %v548_v61 = vmul.f32 %v1050_v21, %v1763_v47 }
 0x119   :  { %v630_v4 = vmul.f32 %v1759_v49, %v629_v19  ;;  %v650_v14 = vmul.f32 %v649_v27, %v1555_v55  ;;  %v689_v48 = vadd.f32 0.0036580483, %v688_v43  ;;  %v520_v44 = vsel %vm517_vm12, %v519_v30, %v515_v9  ;;  %vm1840_vm14 = vmor %vm632_vm8, %vm633_vm11 }
 0x11a   :  { %1051 = vrcp.f32 %v1806_v58  ;;  %v743_v23 = vmul.f32 %v742_v35, %v1706_v28  ;;  %v496_v32 = vmul.f32 %v495_v13, %v1573_v5  ;;  %v549_v37 = vsub.f32 1.0, %v548_v61 }
 0x11b   :  { %1053 = vrcp.f32 %v1811_v34  ;;  %v783_v26 = vmul.f32 %v782_v11, %v1711_v38  ;;  %v535_v31 = vadd.f32 1.1283791, %v534_v8  ;;  %v558_v6 = vand.u32 2147483648, %v1763_v47 }
 0x11c   :  { %v521_v42 = vmul.f32 %v520_v44, %v496_v32  ;;  %v550_v0 = vmul.f32 %v1050_v21, %v549_v37  ;;  %vm553_vm13 = vweird.f32 %v1050_v21  ;;  %v556_v17 = vand.u32 2147483647, %v1763_v47 }
 0x11d   :  { %v631_v56 = vadd.f32 %v1759_v49, %v630_v4  ;;  %v638_v63 = vand.u32 2147483648, %v1732_v51  ;;  %v690_v45 = vmul.f32 %v689_v48, %v1614_v18  ;;  %v726_v5 = vmul.f32 2.1237322e-06, %v1706_v28 }
 0x11e   :  { %v744_v12 = vadd.f32 0.4994258, %v743_v23  ;;  %v766_v36 = vmul.f32 2.1237322e-06, %v1711_v38  ;;  %v551_v19 = vadd.f32 %v1050_v21, %v550_v0  ;;  %vm552_vm15 = vweird.f32 %v1763_v47 }
 0x11f   :  { %vm1846_vm0 = vcmp.eq.f32.partialorder %v636_v53, 8.507059e+37  ;;  %v651_v43 = vadd.f32 0.05243302, %v650_v14  ;;  %v784_v7 = vadd.f32 0.4994258, %v783_v26  ;;  %vm554_vm1 = vmor %vm552_vm15, %vm553_vm13  ;;  %v559_v35 = vor.u32 1.1754944e-38, %v558_v6 }
 0x120   :  { %v1850_v13 = vpop.eup %1051  ;;  %v992_v51 = vclamps-f32 %v521_v42, 1.0  ;;  %v536_v9 = vmul.f32 %v535_v31, %v1648_v46  ;;  %v555_v30 = vsel %vm554_vm1, %v1050_v21, %v551_v19  ;;  %vm557_vm2 = vcmp.eq.f32.partialorder %v556_v17, 8.507059e+37 }
 0x121   :  { %v1853_v11 = vpop.eup %1053  ;;  %v639_v8 = vor.u32 1.1754944e-38, %v638_v63  ;;  %v691_v61 = vadd.f32 0.05243302, %v690_v45  ;;  %v727_v47 = vadd.f32 0.00028619796, %v726_v5  ;;  %v560_v53 = vsel %vm557_vm2, %v559_v35, %v555_v30 }
 0x122   :  { %v635_v4 = vsel %vm1840_vm14, %v1759_v49, %v631_v56  ;;  %v745_v14 = vmul.f32 %v744_v12, %v1706_v28  ;;  %v767_v48 = vadd.f32 0.00028619796, %v766_v36  ;;  %v561_v44 = vmul.f32 %v560_v53, %v536_v9 }
 0x123   :  { %v600_v46 = vsel %vm1816_vm10, %v1768_v41, %v595_v40  ;;  %v652_v21 = vmul.f32 %v651_v43, %v1555_v55  ;;  %v668_v23 = vmul.f32 %v1850_v13, %v1806_v58  ;;  %v785_v49 = vmul.f32 %v784_v7, %v1711_v38 }
 0x124   :  { %v616_v32 = vmul.f32 %v1796_v60, %v1399_v10  ;;  %v708_v33 = vmul.f32 %v1853_v11, %v1811_v34  ;;  %v812_v37 = vadd.f32 1.0, %v992_v51  ;;  %v993_v26 = vclamps-f32 %v561_v44, 1.0 }
 0x125   :  { %v640_v16 = vsel %vm1846_vm0, %v639_v8, %v635_v4  ;;  %v692_v54 = vmul.f32 %v691_v61, %v1614_v18  ;;  %v728_v41 = vmul.f32 %v727_v47, %v1706_v28  ;;  %v140_v40 = vmul.f32 0.5, %v1550_v25 }
 0x126   :  { %v1880_v20 = vadd.f32 1.0, %v745_v14  ;;  %v768_v31 = vmul.f32 %v767_v48, %v1711_v38  ;;  %v141_v10 = vmul.f32 0.5, %v1627_v50  ;;  %v813_v60 = vadd.f32 1.0, %v993_v26 }
 0x127   :  { %v601_v6 = vmul.f32 %v600_v46, %v1746_v24  ;;  %v653_v42 = vadd.f32 0.18741608, %v652_v21  ;;  %v669_v0 = vsub.f32 1.0, %v668_v23  ;;  %v1885_v17 = vadd.f32 1.0, %v785_v49 }
 0x128   :  { %v641_v56 = vmul.f32 %v640_v16, %v616_v32  ;;  %v709_v63 = vsub.f32 1.0, %v708_v33  ;;  %v828_v45 = vmul.f32 %v812_v37, %v140_v40  ;;  %v829_v5 = vmul.f32 %v813_v60, %v141_v10 }
 0x129   :  { %v729_v3 = vadd.f32 0.0036580483, %v728_v41  ;;  %v693_v12 = vadd.f32 0.18741608, %v692_v54  ;;  %1055 = vrcp.f32 %v1880_v20  ;;  %v769_v25 = vadd.f32 0.0036580483, %v768_v31 }
 0x12a   :  { %v840_v36 = vpack.c.bf16 %v829_v5, %v828_v45  ;;  %v670_v19 = vmul.f32 %v1850_v13, %v669_v0  ;;  %1057 = vrcp.f32 %v1885_v17  ;;  %v994_v50 = vclamps-f32 %v601_v6, 1.0 }
 0x12b   :  { %v995_v24 = vclamps-f32 %v641_v56, 1.0  ;;  %v654_v27 = vmul.f32 %v653_v42, %v1555_v55  ;;  %v710_v43 = vmul.f32 %v1853_v11, %v709_v63  ;;  %vm672_vm3 = vweird.f32 %v1806_v58 }
 0x12c   :  { %1012 = vmatmul.msk.bf16.vlgmr.msra.gmra.mxu2 %vm864_vm4, %v840_v36  ;;  %vm673_vm5 = vweird.f32 %v1850_v13  ;;  %v678_v7 = vand.u32 2147483648, %v1806_v58  ;;  %v730_v35 = vmul.f32 %v729_v3, %v1706_v28  ;;  %v694_v51 = vmul.f32 %v693_v12, %v1614_v18 }
 0x12d   :  { %vm712_vm6 = vweird.f32 %v1811_v34  ;;  %vm713_vm7 = vweird.f32 %v1853_v11  ;;  %v770_v55 = vmul.f32 %v769_v25, %v1711_v38  ;;  %v671_v9 = vadd.f32 %v1850_v13, %v670_v19  ;;  %vm1907_vm8 = vmor %vm672_vm3, %vm673_vm5 }
 0x12e   :  { %v676_v30 = vand.u32 2147483647, %v1806_v58  ;;  %v718_v8 = vand.u32 2147483648, %v1811_v34  ;;  %v142_v47 = vmul.f32 0.5, %v1231_v62  ;;  %v711_v18 = vadd.f32 %v1853_v11, %v710_v43  ;;  %vm1918_vm9 = vmor %vm712_vm6, %vm713_vm7 }
 0x12f   :  { %v1904_v61 = vpop.eup %1055  ;;  %v716_v4 = vand.u32 2147483647, %v1811_v34  ;;  %v814_v48 = vadd.f32 1.0, %v994_v50  ;;  %v143_v44 = vmul.f32 0.5, %v1351_v15  ;;  %v655_v58 = vadd.f32 1.1283791, %v654_v27 }
 0x130   :  { %v1913_v14 = vpop.eup %1057  ;;  %v731_v62 = vadd.f32 0.05243302, %v730_v35  ;;  %v815_v21 = vadd.f32 1.0, %v995_v24  ;;  %v679_v23 = vor.u32 1.1754944e-38, %v678_v7  ;;  %v695_v49 = vadd.f32 1.1283791, %v694_v51 }
 0x131   :  { %v771_v32 = vadd.f32 0.05243302, %v770_v55  ;;  %v675_v33 = vsel %vm1907_vm8, %v1850_v13, %v671_v9  ;;  %vm677_vm10 = vcmp.eq.f32.partialorder %v676_v30, 8.507059e+37  ;;  %v719_v37 = vor.u32 1.1754944e-38, %v718_v8 }
 0x132   :  { %v715_v15 = vsel %vm1918_vm9, %v1853_v11, %v711_v18  ;;  %vm717_vm11 = vcmp.eq.f32.partialorder %v716_v4, 8.507059e+37  ;;  %v748_v34 = vmul.f32 %v1904_v61, %v1880_v20  ;;  %v788_v26 = vmul.f32 %v1913_v14, %v1885_v17 }
 0x133   :  { %v830_v16 = vmul.f32 %v814_v48, %v142_v47  ;;  %v656_v54 = vmul.f32 %v655_v58, %v1522_v59  ;;  %v732_v41 = vmul.f32 %v731_v62, %v1706_v28  ;;  %v831_v40 = vmul.f32 %v815_v21, %v143_v44 }
 0x134   :  { %v680_v13 = vsel %vm677_vm10, %v679_v23, %v675_v33  ;;  %v696_v31 = vmul.f32 %v695_v49, %v1561_v2  ;;  %v772_v10 = vmul.f32 %v771_v32, %v1711_v38  ;;  %v720_v60 = vsel %vm717_vm11, %v719_v37, %v715_v15 }
 0x135   :  { %v749_v11 = vsub.f32 1.0, %v748_v34  ;;  %v789_v6 = vsub.f32 1.0, %v788_v26  ;;  %v681_v42 = vmul.f32 %v680_v13, %v656_v54  ;;  %v733_v0 = vadd.f32 0.18741608, %v732_v41 }
 0x136   :  { %v721_v56 = vmul.f32 %v720_v60, %v696_v31  ;;  %v773_v63 = vadd.f32 0.18741608, %v772_v10  ;;  %v841_v45 = vpack.c.bf16 %v831_v40, %v830_v16  ;;  %vm752_vm12 = vweird.f32 %v1880_v20 }
 0x137   :  { %v750_v5 = vmul.f32 %v1904_v61, %v749_v11  ;;  %v790_v59 = vmul.f32 %v1913_v14, %v789_v6  ;;  %v996_v3 = vclamps-f32 %v681_v42, 1.0  ;;  %v734_v12 = vmul.f32 %v733_v0, %v1706_v28 }
 0x138   :  { %vm753_vm13 = vweird.f32 %v1904_v61  ;;  %v997_v2 = vclamps-f32 %v721_v56, 1.0  ;;  %v774_v25 = vmul.f32 %v773_v63, %v1711_v38  ;;  %vm792_vm14 = vweird.f32 %v1885_v17 }
 0x139   :  { %vm793_vm15 = vweird.f32 %v1913_v14  ;;  %v758_v36 = vand.u32 2147483648, %v1880_v20  ;;  %v798_v19 = vand.u32 2147483648, %v1885_v17  ;;  %v751_v50 = vadd.f32 %v1904_v61, %v750_v5  ;;  %vm1948_vm0 = vmor %vm752_vm12, %vm753_vm13 }
 0x13a   :  { %v756_v28 = vand.u32 2147483647, %v1880_v20  ;;  %v791_v27 = vadd.f32 %v1913_v14, %v790_v59  ;;  %v796_v38 = vand.u32 2147483647, %v1885_v17  ;;  %v144_v43 = vmul.f32 0.5, %v1507_v1  ;;  %vm1957_vm1 = vmor %vm792_vm14, %vm793_vm15 }
 0x13b   :  { %v145_v7 = vmul.f32 0.5, %v1539_v52  ;;  %v816_v51 = vadd.f32 1.0, %v996_v3  ;;  %v817_v55 = vadd.f32 1.0, %v997_v2  ;;  %v735_v9 = vadd.f32 1.1283791, %v734_v12 }
 0x13c   :  { %1013 = vmatmul.msk.bf16.gmra.mxu2 %vm864_vm4, %v841_v45  ;;  %v775_v30 = vadd.f32 1.1283791, %v774_v25  ;;  %v759_v8 = vor.u32 1.1754944e-38, %v758_v36  ;;  %v799_v47 = vor.u32 1.1754944e-38, %v798_v19  ;;  %v755_v20 = vsel %vm1948_vm0, %v1904_v61, %v751_v50 }
 0x13d   :  { %vm757_vm2 = vcmp.eq.f32.partialorder %v756_v28, 8.507059e+37  ;;  %v795_v1 = vsel %vm1957_vm1, %v1913_v14, %v791_v27  ;;  %vm797_vm3 = vcmp.eq.f32.partialorder %v796_v38, 8.507059e+37  ;;  %v832_v52 = vmul.f32 %v816_v51, %v144_v43 }
 0x13e   :  { %v833_v17 = vmul.f32 %v817_v55, %v145_v7  ;;  %v736_v53 = vmul.f32 %v735_v9, %v1662_v22  ;;  %v776_v18 = vmul.f32 %v775_v30, %v1679_v57  ;;  %v760_v4 = vsel %vm757_vm2, %v759_v8, %v755_v20  ;;  %v1026_v57 = vld [vmem:[%s1983_s4] ss:$0 sm:$0xff]  ;;  %s1085_s4 = smov [#allocation2]  }
 0x13f   :  { %v800_v48 = vsel %vm797_vm3, %v799_v47, %v795_v1  ;;  %v146_v21 = vmul.f32 0.5, %v1644_v39  ;;  %v147_v14 = vmul.f32 0.5, %v1656_v29  ;;  %s958_s30 = sshll.u32 %s1085_s4, 4  ;;  %s959_s30 = int_to_ptr.vmem [resolvable:$true] %s958_s30 }
 0x140   :  { %v761_v44 = vmul.f32 %v760_v4, %v736_v53  ;;  %v801_v58 = vmul.f32 %v800_v48, %v776_v18  ;;  %v842_v46 = vpack.c.bf16 %v833_v17, %v832_v52 }
 0x142   :  { %v998_v61 = vclamps-f32 %v761_v44, 1.0  ;;  %v999_v62 = vclamps-f32 %v801_v58, 1.0 }
 0x144   :  { %v818_v23 = vadd.f32 1.0, %v998_v61  ;;  %v819_v49 = vadd.f32 1.0, %v999_v62 }
 0x146   :  { %v834_v32 = vmul.f32 %v818_v23, %v146_v21  ;;  %v835_v33 = vmul.f32 %v819_v49, %v147_v14 }
 0x148   :  { %v843_v22 = vpack.c.bf16 %v835_v33, %v834_v32 }
 0x14c   :  { %1014 = vmatmul.msk.bf16.gmra.mxu2 %vm864_vm4, %v842_v46 }
 0x15c   :  { %1015 = vmatmul.msk.bf16.gmra.mxu2 %vm864_vm4, %v843_v22 }
 0x15f   :  { %v898_v37 = vpop.f32.mrf.mxu1 }
 0x160   :  { %v899_v15 = vadd.f32 %v1026_v57, %v898_v37 }
 0x162   :  { %938 = vst [vmem:[#allocation2] sm:$0xff] %v899_v15 }
 0x167   :  { %v900_v34 = vpop.f32.mrf.mxu1 }
 0x168   :  { %v901_v26 = vadd.f32 %v1026_v57, %v900_v34 }
 0x16a   :  { %939 = vst [vmem:[#allocation2 + $0x8] sm:$0xff] %v901_v26 }
 0x16f   :  { %v903_v39 = vpop.f32.mrf.mxu1 }
 0x170   :  { %v904_v16 = vadd.f32 %v1026_v57, %v903_v39 }
 0x172   :  { %940 = vst [vmem:[#allocation2 + $0x10] sm:$0xff] %v904_v16 }
 0x177   :  { %v905_v29 = vpop.f32.mrf.mxu1 }
 0x178   :  { %v906_v54 = vadd.f32 %v1026_v57, %v905_v29 }
 0x17a   :  { %941 = vst [vmem:[#allocation2 + $0x18] sm:$0xff] %v906_v54 }
 0x17f   :  { %v908_v41 = vpop.f32.mrf.mxu1 }
 0x180   :  { %v909_v40 = vadd.f32 %v1026_v57, %v908_v41 }
 0x182   :  { %942 = vst [vmem:[#allocation2 + $0x20] sm:$0xff] %v909_v40 }
 0x187   :  { %v910_v13 = vpop.f32.mrf.mxu1 }
 0x188   :  { %v911_v31 = vadd.f32 %v1026_v57, %v910_v13 }
 0x18a   :  { %943 = vst [vmem:[#allocation2 + $0x28] sm:$0xff] %v911_v31 }
 0x18f   :  { %v913_v10 = vpop.f32.mrf.mxu1 }
 0x190   :  { %v914_v60 = vadd.f32 %v1026_v57, %v913_v10 }
 0x192   :  { %944 = vst [vmem:[#allocation2 + $0x30] sm:$0xff] %v914_v60 }
 0x197   :  { %v915_v11 = vpop.f32.mrf.mxu1 }
 0x198   :  { %v916_v6 = vadd.f32 %v1026_v57, %v915_v11 }
 0x19a   :  { %945 = vst [vmem:[#allocation2 + $0x38] sm:$0xff] %v916_v6 }
 0x1af   :  { %v918_v42 = vpop.f32.mrf.mxu2 }
 0x1b0   :  { %v919_v0 = vadd.f32 %v1026_v57, %v918_v42 }
 0x1b2   :  { %946 = vst [vmem:[#allocation2 + $0x40] sm:$0xff] %v919_v0 }
 0x1b7   :  { %v920_v56 = vpop.f32.mrf.mxu2 }
 0x1b8   :  { %v921_v63 = vadd.f32 %v1026_v57, %v920_v56 }
 0x1ba   :  { %947 = vst [vmem:[#allocation2 + $0x48] sm:$0xff] %v921_v63 }
 0x1bf   :  { %v923_v45 = vpop.f32.mrf.mxu2 }
 0x1c0   :  { %v924_v5 = vadd.f32 %v1026_v57, %v923_v45 }
 0x1c2   :  { %948 = vst [vmem:[#allocation2 + $0x50] sm:$0xff] %v924_v5 }
 0x1c7   :  { %v925_v59 = vpop.f32.mrf.mxu2 }
 0x1c8   :  { %v926_v3 = vadd.f32 %v1026_v57, %v925_v59 }
 0x1ca   :  { %949 = vst [vmem:[#allocation2 + $0x58] sm:$0xff] %v926_v3 }
 0x1cf   :  { %v928_v12 = vpop.f32.mrf.mxu2 }
 0x1d0   :  { %v929_v2 = vadd.f32 %v1026_v57, %v928_v12 }
 0x1d2   :  { %950 = vst [vmem:[#allocation2 + $0x60] sm:$0xff] %v929_v2 }
 0x1d7   :  { %v930_v25 = vpop.f32.mrf.mxu2 }
 0x1d8   :  { %v931_v36 = vadd.f32 %v1026_v57, %v930_v25 }
 0x1da   :  { %951 = vst [vmem:[#allocation2 + $0x68] sm:$0xff] %v931_v36 }
 0x1df   :  { %v933_v19 = vpop.f32.mrf.mxu2 }
 0x1e0   :  { %v934_v50 = vadd.f32 %v1026_v57, %v933_v19 }
 0x1e2   :  { %952 = vst [vmem:[#allocation2 + $0x70] sm:$0xff] %v934_v50 }
 0x1e7   :  { %v935_v24 = vpop.f32.mrf.mxu2 }
 0x1e8   :  { %v936_v28 = vadd.f32 %v1026_v57, %v935_v24 }
 0x1ea   :  { %953 = vst [vmem:[#allocation2 + $0x78] sm:$0xff] %v936_v28 }
 0x1eb   :  { %966 = dma.vmem_to_hbm [thread:$0]  %s959_s30, 2048, %s961_s8, [#allocation3], %s1086_s9, %s1086_s9, %s1087_s10  }
 0x1ec   :  { %1083 = dma.done.wait [#allocation3], 2048  }
 0x1ed   :  { %1084 = vsyncadd [#allocation3], 4294965248 }
 0x1ee   :  { %971 = vsyncpa [#allocation3], 1 }

</bundles_post_ra>
